<compile_context>
chip_gen: v7x
topology: tpu7x:2x2x1
jax: 0.10.0
libtpu: 0.0.40
codegen_flags: <defaults>
</compile_context>

<pallas_src>
import math
import functools

import jax
import jax.numpy as jnp
from jax import lax
from jax.experimental import pallas as pl
from jax.experimental.pallas import tpu as pltpu


def _layer_norm(x, gamma, beta, eps):
    mu = jnp.mean(x, axis=-1, keepdims=True)
    xc = x - mu
    var = jnp.mean(xc * xc, axis=-1, keepdims=True)
    return xc * lax.rsqrt(var + eps) * gamma + beta


def _decoder_layer_kernel(*refs, n_heads, key_dim, bb, nq, g, norm_factor, eps, has_mask):
    if has_mask:
        (mask_ref, tgt_ref, mem_ref,
         wq_ref, wkv_ref, wo_ref,
         ln1g_ref, ln1b_ref, ln2g_ref, ln2b_ref,
         w1_ref, b1_ref, w2_ref, b2_ref, o_ref) = refs
    else:
        (tgt_ref, mem_ref,
         wq_ref, wkv_ref, wo_ref,
         ln1g_ref, ln1b_ref, ln2g_ref, ln2b_ref,
         w1_ref, b1_ref, w2_ref, b2_ref, o_ref) = refs

    f32 = jnp.float32
    bf16 = jnp.bfloat16
    hk = n_heads * key_dim

    tgt = tgt_ref[...]                                   # (bb*nq, D) f32
    mem = mem_ref[...]                                   # (bb*g,  D) f32

    tgt_n = _layer_norm(tgt, ln1g_ref[...], ln1b_ref[...], eps)
    mem_n = _layer_norm(mem, ln1g_ref[...], ln1b_ref[...], eps)

    # Fused projections (bf16 feed, f32 accumulation): all heads at once.
    q2 = jnp.dot(tgt_n.astype(bf16), wq_ref[...],
                 preferred_element_type=f32).astype(bf16)            # (bb*nq, H*kd)
    kv2 = jnp.dot(mem_n.astype(bf16), wkv_ref[...],
                  preferred_element_type=f32).astype(bf16)           # (bb*g, 2*H*kd)

    if has_mask:
        mask3 = mask_ref[...].astype(f32)                # (bb, mq, g); 1.0 == masked out
        neg_bias = mask3 * jnp.float32(-1e9)             # broadcasts over query dim if mq==1
        keep = 1.0 - mask3

    # Per-head attention: tiny (nq x kd x g) batched matmuls, single leading batch dim.
    head_ctx = []
    for h in range(n_heads):
        qh = q2[:, h * key_dim:(h + 1) * key_dim].reshape(bb, nq, key_dim)
        kh = kv2[:, h * key_dim:(h + 1) * key_dim].reshape(bb, g, key_dim)
        vh = kv2[:, hk + h * key_dim: hk + (h + 1) * key_dim].reshape(bb, g, key_dim)

        u = norm_factor * lax.dot_general(
            qh, kh, dimension_numbers=(((2,), (2,)), ((0,), (0,))),
            preferred_element_type=f32)                              # (bb, nq, g)
        if has_mask:
            u = u + neg_bias
        m = jnp.max(u, axis=-1, keepdims=True)
        e = jnp.exp(u - m)
        att = e * pl.reciprocal(jnp.sum(e, axis=-1, keepdims=True), approx=True)
        if has_mask:
            att = att * keep                                         # zero masked probs

        ctx = lax.dot_general(
            att.astype(bf16), vh, dimension_numbers=(((2,), (1,)), ((0,), (0,))),
            preferred_element_type=f32)                              # (bb, nq, kd)
        head_ctx.append(ctx.reshape(bb * nq, key_dim))

    # Fused output projection: one K=128 matmul over the concatenated heads.
    ctx_cat = jnp.concatenate(head_ctx, axis=-1).astype(bf16)        # (bb*nq, H*kd)
    attn_out = jnp.dot(ctx_cat, wo_ref[...], preferred_element_type=f32)  # (bb*nq, D)

    h1 = attn_out + tgt                                              # residual (h0)
    hn = _layer_norm(h1, ln2g_ref[...], ln2b_ref[...], eps)
    ff = jnp.dot(hn.astype(bf16), w1_ref[...], preferred_element_type=f32) + b1_ref[...]
    ff = jnp.maximum(ff, 0.0)
    ff = jnp.dot(ff.astype(bf16), w2_ref[...], preferred_element_type=f32) + b2_ref[...]
    o_ref[...] = (ff + h1).astype(o_ref.dtype)


def _lcm(a, b):
    return a * b // math.gcd(a, b)


def _round_up(x, k):
    return -(-x // k) * k


def _choose_block_b(B, Nq, G, D):
    """Batch elements per grid step: sublane-legal, VMEM-bounded, >=2 steps if possible."""
    # sublane divisibility ((block_b*Nq) % 8 == 0 and (block_b*G) % 8 == 0) needed when nb > 1
    m = _lcm(8 // math.gcd(Nq, 8), 8 // math.gcd(G, 8))
    by_rows = max(1, 512 // max(Nq, 1))                          # ~512 query rows per step
    by_bytes = max(1, (4 * 1024 * 1024) // (max(Nq, G) * D * 4))  # <=~4 MiB per streamed block
    bb = max(1, min(by_rows, by_bytes))
    bb = min(_round_up(bb, m), _round_up(B, m))
    nb = -(-B // bb)
    if nb == 1 and B > 1:
        # split into (at least) two grid steps so both v7x TensorCores get work
        half = _round_up(-(-B // 2), m)
        if half < bb:
            bb = half
            nb = -(-B // bb)
    return bb, nb


def decoder_layer(tgt, memory, params, mask=None, *, block_b=None):
    """Pallas implementation of DecoderLayer.forward.

    tgt:    (B, Nq, D) float32
    memory: (B, G,  D) float32
    mask:   None, or array viewable as (B, G) / (B, Nq, G); nonzero == masked out
    returns (B, Nq, D) float32
    """
    tgt = jnp.asarray(tgt, jnp.float32)
    memory = jnp.asarray(memory, jnp.float32)
    B, Nq, D = tgt.shape
    G = memory.shape[1]
    bf16 = jnp.bfloat16

    wq = jnp.asarray(params["w_query"], jnp.float32)     # (H, D, kd)
    wk = jnp.asarray(params["w_key"], jnp.float32)
    wv = jnp.asarray(params["w_value"], jnp.float32)
    wo = jnp.asarray(params["w_out"], jnp.float32)       # (H, kd, D)
    H, _, kd = wq.shape
    hk = H * kd
    w1 = jnp.asarray(params["w1"], jnp.float32)          # (D, FF)
    w2 = jnp.asarray(params["w2"], jnp.float32)          # (FF, D)
    FF = w1.shape[1]

    # Head-fused weight layouts; bf16 so the MXU is fed natively (f32 accumulation in-kernel).
    WQ = jnp.transpose(wq, (1, 0, 2)).reshape(D, hk).astype(bf16)           # (D, H*kd)
    WK = jnp.transpose(wk, (1, 0, 2)).reshape(D, hk)
    WV = jnp.transpose(wv, (1, 0, 2)).reshape(D, hk)
    WKV = jnp.concatenate([WK, WV], axis=1).astype(bf16)                    # (D, 2*H*kd)
    WO = wo.reshape(hk, D).astype(bf16)                                     # (H*kd, D)
    W1 = w1.astype(bf16)
    W2 = w2.astype(bf16)
    b1 = jnp.asarray(params["b1"], jnp.float32).reshape(1, FF)
    b2 = jnp.asarray(params["b2"], jnp.float32).reshape(1, D)
    ln1g = jnp.asarray(params["ln1_g"], jnp.float32).reshape(1, D)
    ln1b = jnp.asarray(params["ln1_b"], jnp.float32).reshape(1, D)
    ln2g = jnp.asarray(params["ln2_g"], jnp.float32).reshape(1, D)
    ln2b = jnp.asarray(params["ln2_b"], jnp.float32).reshape(1, D)

    eps = 1e-5
    norm_factor = 1.0 / math.sqrt(kd)

    if block_b is None:
        block_b, nb = _choose_block_b(B, Nq, G, D)
    else:
        nb = -(-B // block_b)
    Bp = nb * block_b

    def pad_b(x):
        if Bp == B:
            return x
        return jnp.pad(x, ((0, Bp - B),) + ((0, 0),) * (x.ndim - 1))

    # 2-D lane-dense slabs: rows ordered (batch, seq), last dim = embedding.
    tgt2 = pad_b(tgt).reshape(Bp * Nq, D)
    mem2 = pad_b(memory).reshape(Bp * G, D)

    row_q = block_b * Nq
    row_k = block_b * G
    tgt_spec = pl.BlockSpec((row_q, D), lambda i: (i, 0))
    mem_spec = pl.BlockSpec((row_k, D), lambda i: (i, 0))
    out_spec = pl.BlockSpec((row_q, D), lambda i: (i, 0))

    def full_spec(a):
        nd = a.ndim
        return pl.BlockSpec(a.shape, lambda i, _nd=nd: (0,) * _nd)

    weight_args = (WQ, WKV, WO, ln1g, ln1b, ln2g, ln2b, W1, b1, W2, b2)
    weight_specs = [full_spec(a) for a in weight_args]

    has_mask = mask is not None
    call_args = []
    in_specs = []
    mq = 1
    if has_mask:
        m = jnp.asarray(mask)
        if m.ndim == 2:
            m = m[:, None, :]
        m = m.reshape(B, -1, G).astype(jnp.float32)
        mq = m.shape[1]
        assert mq in (1, Nq), "mask must be viewable as (B, G) or (B, n_query, G)"
        m = pad_b(m)                                                  # (Bp, mq, G)
        call_args.append(m)
        in_specs.append(pl.BlockSpec((block_b, mq, G), lambda i: (i, 0, 0)))
    call_args += [tgt2, mem2, *weight_args]
    in_specs += [tgt_spec, mem_spec, *weight_specs]

    kernel = functools.partial(
        _decoder_layer_kernel, n_heads=H, key_dim=kd, bb=block_b, nq=Nq, g=G,
        norm_factor=norm_factor, eps=eps, has_mask=has_mask)

    flops = int(2 * Bp * Nq * D * hk               # fused Q projection
                + 2 * Bp * G * D * (2 * hk)        # fused K/V projection
                + 2 * 2 * Bp * Nq * G * hk         # scores + att @ V (all heads)
                + 2 * Bp * Nq * hk * D             # fused output projection
                + 2 * 2 * Bp * Nq * D * FF)        # feed-forward
    transcendentals = int(H * Bp * Nq * (G + 1) + 2 * Bp * Nq + Bp * G)
    bytes_accessed = int(4 * (tgt2.size + mem2.size + Bp * Nq * D
                              + (Bp * mq * G if has_mask else 0))
                         + sum(int(a.size) * a.dtype.itemsize for a in weight_args))

    # VMEM budget: double-buffered streamed blocks + one copy of the weights + the largest
    # in-kernel intermediates (FFN hidden, Q/KV slabs, LN/residual copies), with headroom.
    block_bytes = 4 * (2 * row_q * D + row_k * D) + 4 * (block_b * mq * G if has_mask else 0)
    interm_bytes = 4 * row_q * FF + 4 * 4 * row_q * D + 2 * row_k * 2 * hk
    weight_bytes = sum(int(a.size) * a.dtype.itemsize for a in weight_args)
    vmem_limit = int(min(max(32 * 1024 * 1024,
                             2 * block_bytes + weight_bytes + interm_bytes + (8 << 20)),
                         56 * 1024 * 1024))

    out2 = pl.pallas_call(
        kernel,
        out_shape=jax.ShapeDtypeStruct((Bp * Nq, D), jnp.float32),
        grid_spec=pltpu.PrefetchScalarGridSpec(
            num_scalar_prefetch=0,
            grid=(nb,),
            in_specs=in_specs,
            out_specs=out_spec,
        ),
        compiler_params=pltpu.CompilerParams(
            dimension_semantics=("parallel",),
            vmem_limit_bytes=vmem_limit),
        cost_estimate=pl.CostEstimate(flops=flops,
                                      transcendentals=transcendentals,
                                      bytes_accessed=bytes_accessed),
    )(*call_args)

    return out2.reshape(Bp, Nq, D)[:B]


def _reference(tgt, memory, params, mask=None):
    """Pure-JAX f32 mirror of DecoderLayer.forward (PyTorch semantics)."""
    eps = 1e-5
    B, Nq, D = tgt.shape
    G = memory.shape[1]
    H, _, kd = params["w_query"].shape

    def ln(x, g, b):
        mu = jnp.mean(x, axis=-1, keepdims=True)
        var = jnp.mean((x - mu) ** 2, axis=-1, keepdims=True)
        return (x - mu) / jnp.sqrt(var + eps) * g + b

    h0 = tgt
    tgt_n = ln(tgt, params["ln1_g"], params["ln1_b"])
    mem_n = ln(memory, params["ln1_g"], params["ln1_b"])

    Q = jnp.einsum("bnd,hdk->hbnk", tgt_n, params["w_query"])
    K = jnp.einsum("bgd,hdk->hbgk", mem_n, params["w_key"])
    V = jnp.einsum("bgd,hdk->hbgk", mem_n, params["w_value"])
    U = (1.0 / math.sqrt(kd)) * jnp.einsum("hbnk,hbgk->hbng", Q, K)
    if mask is not None:
        m = jnp.broadcast_to(jnp.asarray(mask).reshape(1, B, -1, G).astype(bool), U.shape)
        U = jnp.where(m, -jnp.inf, U)
    att = jax.nn.softmax(U, axis=-1)
    if mask is not None:
        att = jnp.where(m, 0.0, att)
    heads = jnp.einsum("hbng,hbgk->hbnk", att, V)                       # (H,B,Nq,kd)
    hc = jnp.transpose(heads, (1, 2, 0, 3)).reshape(B * Nq, H * kd)
    out = (hc @ params["w_out"].reshape(H * kd, D)).reshape(B, Nq, D)

    h = out + h0
    h1 = h
    hn = ln(h, params["ln2_g"], params["ln2_b"])
    ff = jnp.maximum(hn @ params["w1"] + params["b1"], 0.0)
    ff = ff @ params["w2"] + params["b2"]
    return ff + h1


if __name__ == "__main__":
    # Small deterministic shapes consistent with the module: embedding_dim=128 (lane-dense),
    # n_heads=8 -> key_dim=16, FFN hidden=512, batch=2, n_query=8, graph_size=16.
    B, Nq, G, D, H, FF = 2, 8, 16, 128, 8, 512
    kd = D // H
    key = jax.random.PRNGKey(0)
    keys = jax.random.split(key, 12)

    tgt = jax.random.normal(keys[0], (B, Nq, D), dtype=jnp.float32)
    memory = jax.random.normal(keys[1], (B, G, D), dtype=jnp.float32)

    def uni(k, shape, fan):
        s = 1.0 / math.sqrt(fan)
        return jax.random.uniform(k, shape, minval=-s, maxval=s, dtype=jnp.float32)

    params = {
        # PyTorch init: uniform(-1/sqrt(param.size(-1)), +...)
        "w_query": uni(keys[2], (H, D, kd), kd),
        "w_key":   uni(keys[3], (H, D, kd), kd),
        "w_value": uni(keys[4], (H, D, kd), kd),
        "w_out":   uni(keys[5], (H, kd, D), D),
        "ln1_g":   1.0 + 0.1 * jax.random.normal(keys[6], (D,), dtype=jnp.float32),
        "ln1_b":   0.05 * jax.random.normal(keys[7], (D,), dtype=jnp.float32),
        "ln2_g":   1.0 + 0.1 * jax.random.normal(keys[8], (D,), dtype=jnp.float32),
        "ln2_b":   0.05 * jax.random.normal(keys[9], (D,), dtype=jnp.float32),
        "w1":      uni(keys[10], (D, FF), D),
        "b1":      jnp.zeros((FF,), jnp.float32),
        "w2":      uni(keys[11], (FF, D), FF),
        "b2":      jnp.zeros((D,), jnp.float32),
    }

    # Mask viewable as (B, G): 1 == attention not possible; keep column 0 attendable.
    mask = (jax.random.uniform(jax.random.PRNGKey(42), (B, G)) < 0.25)
    mask = mask.at[:, 0].set(False).astype(jnp.int32)

    def check(name, out, ref):
        # bf16 MXU feeds (f32 accumulation) -> compare with a scale-aware tolerance
        err = float(jnp.max(jnp.abs(out - ref)))
        scale = float(jnp.max(jnp.abs(ref)))
        assert err <= 5e-2 * max(scale, 1.0), (name, err, scale)

    # No-mask path
    out = jax.block_until_ready(decoder_layer(tgt, memory, params, mask=None))
    ref = _reference(tgt, memory, params, mask=None)
    assert out.shape == (B, Nq, D)
    check("no-mask", out, ref)

    # Masked path
    out_m = jax.block_until_ready(decoder_layer(tgt, memory, params, mask=mask))
    ref_m = _reference(tgt, memory, params, mask=mask)
    check("masked", out_m, ref_m)

    print("KERNEL_OK")
</pallas_src>

<mosaic_0001>
module attributes {stable_mosaic.version = 11 : i64} {
  func.func @_decoder_layer_kernel(%arg0: i32, %arg1: memref<8x128xf32, #tpu.memory_space<vmem>>, %arg2: memref<16x128xf32, #tpu.memory_space<vmem>>, %arg3: memref<128x128xbf16, #tpu.memory_space<vmem>>, %arg4: memref<128x256xbf16, #tpu.memory_space<vmem>>, %arg5: memref<128x128xbf16, #tpu.memory_space<vmem>>, %arg6: memref<1x128xf32, #tpu.memory_space<vmem>>, %arg7: memref<1x128xf32, #tpu.memory_space<vmem>>, %arg8: memref<1x128xf32, #tpu.memory_space<vmem>>, %arg9: memref<1x128xf32, #tpu.memory_space<vmem>>, %arg10: memref<128x512xbf16, #tpu.memory_space<vmem>>, %arg11: memref<1x512xf32, #tpu.memory_space<vmem>>, %arg12: memref<512x128xbf16, #tpu.memory_space<vmem>>, %arg13: memref<1x128xf32, #tpu.memory_space<vmem>>, %arg14: memref<8x128xf32, #tpu.memory_space<vmem>>) attributes {dimension_semantics = [#tpu.dimension_semantics<parallel>], iteration_bounds = array<i64: 2>, scalar_prefetch = 0 : i64, scratch_operands = 0 : i64, tpu.core_type = #tpu.core_type<tc>, window_params = [{transform_indices = @transform_0, window_bounds = array<i64: 8, 128>}, {transform_indices = @transform_1, window_bounds = array<i64: 16, 128>}, {pipeline_mode = #tpu.pipeline_mode<synchronous>, transform_indices = @transform_2, window_bounds = array<i64: 128, 128>}, {pipeline_mode = #tpu.pipeline_mode<synchronous>, transform_indices = @transform_3, window_bounds = array<i64: 128, 256>}, {pipeline_mode = #tpu.pipeline_mode<synchronous>, transform_indices = @transform_4, window_bounds = array<i64: 128, 128>}, {pipeline_mode = #tpu.pipeline_mode<synchronous>, transform_indices = @transform_5, window_bounds = array<i64: 1, 128>}, {pipeline_mode = #tpu.pipeline_mode<synchronous>, transform_indices = @transform_6, window_bounds = array<i64: 1, 128>}, {pipeline_mode = #tpu.pipeline_mode<synchronous>, transform_indices = @transform_7, window_bounds = array<i64: 1, 128>}, {pipeline_mode = #tpu.pipeline_mode<synchronous>, transform_indices = @transform_8, window_bounds = array<i64: 1, 128>}, {pipeline_mode = #tpu.pipeline_mode<synchronous>, transform_indices = @transform_9, window_bounds = array<i64: 128, 512>}, {pipeline_mode = #tpu.pipeline_mode<synchronous>, transform_indices = @transform_10, window_bounds = array<i64: 1, 512>}, {pipeline_mode = #tpu.pipeline_mode<synchronous>, transform_indices = @transform_11, window_bounds = array<i64: 512, 128>}, {pipeline_mode = #tpu.pipeline_mode<synchronous>, transform_indices = @transform_12, window_bounds = array<i64: 1, 128>}, {transform_indices = @transform_13, window_bounds = array<i64: 8, 128>}]} {
    %c0 = arith.constant 0 : index
    %c0_0 = arith.constant 0 : index
    %0 = vector.load %arg1[%c0, %c0_0] : memref<8x128xf32, #tpu.memory_space<vmem>>, vector<8x128xf32>
    %c0_1 = arith.constant 0 : index
    %c0_2 = arith.constant 0 : index
    %1 = vector.load %arg2[%c0_1, %c0_2] : memref<16x128xf32, #tpu.memory_space<vmem>>, vector<16x128xf32>
    %c0_3 = arith.constant 0 : index
    %c0_4 = arith.constant 0 : index
    %2 = vector.load %arg6[%c0_3, %c0_4] : memref<1x128xf32, #tpu.memory_space<vmem>>, vector<1x128xf32>
    %c0_5 = arith.constant 0 : index
    %c0_6 = arith.constant 0 : index
    %3 = vector.load %arg7[%c0_5, %c0_6] : memref<1x128xf32, #tpu.memory_space<vmem>>, vector<1x128xf32>
    %cst = arith.constant dense<0.000000e+00> : vector<8xf32>
    %4 = vector.multi_reduction <add>, %0, %cst [1] : vector<8x128xf32> to vector<8xf32>
    %5 = vector.shape_cast %4 : vector<8xf32> to vector<8x1xf32>
    %cst_7 = arith.constant 1.280000e+02 : f32
    %6 = vector.broadcast %cst_7 : f32 to vector<8x1xf32>
    %7 = arith.divf %5, %6 : vector<8x1xf32>
    %8 = vector.broadcast %7 : vector<8x1xf32> to vector<8x128xf32>
    %9 = arith.subf %0, %8 : vector<8x128xf32>
    %10 = arith.mulf %9, %9 : vector<8x128xf32>
    %cst_8 = arith.constant dense<0.000000e+00> : vector<8xf32>
    %11 = vector.multi_reduction <add>, %10, %cst_8 [1] : vector<8x128xf32> to vector<8xf32>
    %12 = vector.shape_cast %11 : vector<8xf32> to vector<8x1xf32>
    %cst_9 = arith.constant 1.280000e+02 : f32
    %13 = vector.broadcast %cst_9 : f32 to vector<8x1xf32>
    %14 = arith.divf %12, %13 : vector<8x1xf32>
    %cst_10 = arith.constant 9.99999974E-6 : f32
    %15 = vector.broadcast %cst_10 : f32 to vector<8x1xf32>
    %16 = arith.addf %14, %15 : vector<8x1xf32>
    %17 = math.rsqrt %16 : vector<8x1xf32>
    %18 = vector.broadcast %17 : vector<8x1xf32> to vector<8x128xf32>
    %19 = arith.mulf %9, %18 : vector<8x128xf32>
    %20 = vector.broadcast %2 : vector<1x128xf32> to vector<8x128xf32>
    %21 = arith.mulf %19, %20 : vector<8x128xf32>
    %22 = vector.broadcast %3 : vector<1x128xf32> to vector<8x128xf32>
    %23 = arith.addf %21, %22 : vector<8x128xf32>
    %c0_11 = arith.constant 0 : index
    %c0_12 = arith.constant 0 : index
    %24 = vector.load %arg6[%c0_11, %c0_12] : memref<1x128xf32, #tpu.memory_space<vmem>>, vector<1x128xf32>
    %c0_13 = arith.constant 0 : index
    %c0_14 = arith.constant 0 : index
    %25 = vector.load %arg7[%c0_13, %c0_14] : memref<1x128xf32, #tpu.memory_space<vmem>>, vector<1x128xf32>
    %cst_15 = arith.constant dense<0.000000e+00> : vector<16xf32>
    %26 = vector.multi_reduction <add>, %1, %cst_15 [1] : vector<16x128xf32> to vector<16xf32>
    %27 = vector.shape_cast %26 : vector<16xf32> to vector<16x1xf32>
    %cst_16 = arith.constant 1.280000e+02 : f32
    %28 = vector.broadcast %cst_16 : f32 to vector<16x1xf32>
    %29 = arith.divf %27, %28 : vector<16x1xf32>
    %30 = vector.broadcast %29 : vector<16x1xf32> to vector<16x128xf32>
    %31 = arith.subf %1, %30 : vector<16x128xf32>
    %32 = arith.mulf %31, %31 : vector<16x128xf32>
    %cst_17 = arith.constant dense<0.000000e+00> : vector<16xf32>
    %33 = vector.multi_reduction <add>, %32, %cst_17 [1] : vector<16x128xf32> to vector<16xf32>
    %34 = vector.shape_cast %33 : vector<16xf32> to vector<16x1xf32>
    %cst_18 = arith.constant 1.280000e+02 : f32
    %35 = vector.broadcast %cst_18 : f32 to vector<16x1xf32>
    %36 = arith.divf %34, %35 : vector<16x1xf32>
    %cst_19 = arith.constant 9.99999974E-6 : f32
    %37 = vector.broadcast %cst_19 : f32 to vector<16x1xf32>
    %38 = arith.addf %36, %37 : vector<16x1xf32>
    %39 = math.rsqrt %38 : vector<16x1xf32>
    %40 = vector.broadcast %39 : vector<16x1xf32> to vector<16x128xf32>
    %41 = arith.mulf %31, %40 : vector<16x128xf32>
    %42 = vector.broadcast %24 : vector<1x128xf32> to vector<16x128xf32>
    %43 = arith.mulf %41, %42 : vector<16x128xf32>
    %44 = vector.broadcast %25 : vector<1x128xf32> to vector<16x128xf32>
    %45 = arith.addf %43, %44 : vector<16x128xf32>
    %46 = arith.truncf %23 : vector<8x128xf32> to vector<8x128xbf16>
    %c0_20 = arith.constant 0 : index
    %c0_21 = arith.constant 0 : index
    %47 = vector.load %arg3[%c0_20, %c0_21] : memref<128x128xbf16, #tpu.memory_space<vmem>>, vector<128x128xbf16>
    %cst_22 = arith.constant dense<0.000000e+00> : vector<8x128xf32>
    %48 = tpu.matmul %46, %47, %cst_22 {dimension_numbers = #tpu.dot_dimension_numbers<[1], [0], [0], [1], [0, 0, 1, 1], [], []>} : vector<8x128xbf16>, vector<128x128xbf16>, vector<8x128xf32> -> vector<8x128xf32>
    %49 = arith.truncf %48 : vector<8x128xf32> to vector<8x128xbf16>
    %50 = arith.truncf %45 : vector<16x128xf32> to vector<16x128xbf16>
    %c0_23 = arith.constant 0 : index
    %c0_24 = arith.constant 0 : index
    %51 = vector.load %arg4[%c0_23, %c0_24] : memref<128x256xbf16, #tpu.memory_space<vmem>>, vector<128x256xbf16>
    %cst_25 = arith.constant dense<0.000000e+00> : vector<16x256xf32>
    %52 = tpu.matmul %50, %51, %cst_25 {dimension_numbers = #tpu.dot_dimension_numbers<[1], [0], [0], [1], [0, 0, 1, 1], [], []>} : vector<16x128xbf16>, vector<128x256xbf16>, vector<16x256xf32> -> vector<16x256xf32>
    %53 = arith.truncf %52 : vector<16x256xf32> to vector<16x256xbf16>
    %54 = vector.extract_strided_slice %49 {offsets = [0, 0], sizes = [8, 16], strides = [1, 1]} : vector<8x128xbf16> to vector<8x16xbf16>
    %55 = vector.shape_cast %54 : vector<8x16xbf16> to vector<1x8x16xbf16>
    %56 = vector.extract_strided_slice %53 {offsets = [0, 0], sizes = [16, 16], strides = [1, 1]} : vector<16x256xbf16> to vector<16x16xbf16>
    %57 = vector.shape_cast %56 : vector<16x16xbf16> to vector<1x16x16xbf16>
    %58 = vector.extract_strided_slice %53 {offsets = [0, 128], sizes = [16, 16], strides = [1, 1]} : vector<16x256xbf16> to vector<16x16xbf16>
    %59 = vector.shape_cast %58 : vector<16x16xbf16> to vector<1x16x16xbf16>
    %cst_26 = arith.constant dense<0.000000e+00> : vector<1x8x16xf32>
    %60 = tpu.matmul %55, %57, %cst_26 {dimension_numbers = #tpu.dot_dimension_numbers<[2], [2], [1], [1], [0, 0, 0, 1, 1, 1], [0], [0]>} : vector<1x8x16xbf16>, vector<1x16x16xbf16>, vector<1x8x16xf32> -> vector<1x8x16xf32>
    %cst_27 = arith.constant 2.500000e-01 : f32
    %61 = vector.broadcast %cst_27 : f32 to vector<1x8x16xf32>
    %62 = arith.mulf %61, %60 : vector<1x8x16xf32>
    %cst_28 = arith.constant dense<0xFF800000> : vector<1x8xf32>
    %63 = vector.multi_reduction <maximumf>, %62, %cst_28 [2] : vector<1x8x16xf32> to vector<1x8xf32>
    %64 = vector.shape_cast %63 : vector<1x8xf32> to vector<1x8x1xf32>
    %65 = vector.broadcast %64 : vector<1x8x1xf32> to vector<1x8x16xf32>
    %66 = arith.subf %62, %65 : vector<1x8x16xf32>
    %67 = math.exp %66 : vector<1x8x16xf32>
    %cst_29 = arith.constant dense<0.000000e+00> : vector<1x8xf32>
    %68 = vector.multi_reduction <add>, %67, %cst_29 [2] : vector<1x8x16xf32> to vector<1x8xf32>
    %69 = vector.shape_cast %68 : vector<1x8xf32> to vector<1x8x1xf32>
    %70 = tpu.reciprocal %69 {approx = true} : vector<1x8x1xf32> -> vector<1x8x1xf32>
    %71 = vector.broadcast %70 : vector<1x8x1xf32> to vector<1x8x16xf32>
    %72 = arith.mulf %67, %71 : vector<1x8x16xf32>
    %73 = arith.truncf %72 : vector<1x8x16xf32> to vector<1x8x16xbf16>
    %cst_30 = arith.constant dense<0.000000e+00> : vector<1x8x16xf32>
    %74 = tpu.matmul %73, %59, %cst_30 {dimension_numbers = #tpu.dot_dimension_numbers<[2], [1], [1], [2], [0, 0, 0, 1, 1, 2], [0], [0]>} : vector<1x8x16xbf16>, vector<1x16x16xbf16>, vector<1x8x16xf32> -> vector<1x8x16xf32>
    %75 = vector.shape_cast %74 : vector<1x8x16xf32> to vector<8x16xf32>
    %76 = vector.extract_strided_slice %49 {offsets = [0, 16], sizes = [8, 16], strides = [1, 1]} : vector<8x128xbf16> to vector<8x16xbf16>
    %77 = vector.shape_cast %76 : vector<8x16xbf16> to vector<1x8x16xbf16>
    %78 = vector.extract_strided_slice %53 {offsets = [0, 16], sizes = [16, 16], strides = [1, 1]} : vector<16x256xbf16> to vector<16x16xbf16>
    %79 = vector.shape_cast %78 : vector<16x16xbf16> to vector<1x16x16xbf16>
    %80 = vector.extract_strided_slice %53 {offsets = [0, 144], sizes = [16, 16], strides = [1, 1]} : vector<16x256xbf16> to vector<16x16xbf16>
    %81 = vector.shape_cast %80 : vector<16x16xbf16> to vector<1x16x16xbf16>
    %cst_31 = arith.constant dense<0.000000e+00> : vector<1x8x16xf32>
    %82 = tpu.matmul %77, %79, %cst_31 {dimension_numbers = #tpu.dot_dimension_numbers<[2], [2], [1], [1], [0, 0, 0, 1, 1, 1], [0], [0]>} : vector<1x8x16xbf16>, vector<1x16x16xbf16>, vector<1x8x16xf32> -> vector<1x8x16xf32>
    %cst_32 = arith.constant 2.500000e-01 : f32
    %83 = vector.broadcast %cst_32 : f32 to vector<1x8x16xf32>
    %84 = arith.mulf %83, %82 : vector<1x8x16xf32>
    %cst_33 = arith.constant dense<0xFF800000> : vector<1x8xf32>
    %85 = vector.multi_reduction <maximumf>, %84, %cst_33 [2] : vector<1x8x16xf32> to vector<1x8xf32>
    %86 = vector.shape_cast %85 : vector<1x8xf32> to vector<1x8x1xf32>
    %87 = vector.broadcast %86 : vector<1x8x1xf32> to vector<1x8x16xf32>
    %88 = arith.subf %84, %87 : vector<1x8x16xf32>
    %89 = math.exp %88 : vector<1x8x16xf32>
    %cst_34 = arith.constant dense<0.000000e+00> : vector<1x8xf32>
    %90 = vector.multi_reduction <add>, %89, %cst_34 [2] : vector<1x8x16xf32> to vector<1x8xf32>
    %91 = vector.shape_cast %90 : vector<1x8xf32> to vector<1x8x1xf32>
    %92 = tpu.reciprocal %91 {approx = true} : vector<1x8x1xf32> -> vector<1x8x1xf32>
    %93 = vector.broadcast %92 : vector<1x8x1xf32> to vector<1x8x16xf32>
    %94 = arith.mulf %89, %93 : vector<1x8x16xf32>
    %95 = arith.truncf %94 : vector<1x8x16xf32> to vector<1x8x16xbf16>
    %cst_35 = arith.constant dense<0.000000e+00> : vector<1x8x16xf32>
    %96 = tpu.matmul %95, %81, %cst_35 {dimension_numbers = #tpu.dot_dimension_numbers<[2], [1], [1], [2], [0, 0, 0, 1, 1, 2], [0], [0]>} : vector<1x8x16xbf16>, vector<1x16x16xbf16>, vector<1x8x16xf32> -> vector<1x8x16xf32>
    %97 = vector.shape_cast %96 : vector<1x8x16xf32> to vector<8x16xf32>
    %98 = vector.extract_strided_slice %49 {offsets = [0, 32], sizes = [8, 16], strides = [1, 1]} : vector<8x128xbf16> to vector<8x16xbf16>
    %99 = vector.shape_cast %98 : vector<8x16xbf16> to vector<1x8x16xbf16>
    %100 = vector.extract_strided_slice %53 {offsets = [0, 32], sizes = [16, 16], strides = [1, 1]} : vector<16x256xbf16> to vector<16x16xbf16>
    %101 = vector.shape_cast %100 : vector<16x16xbf16> to vector<1x16x16xbf16>
    %102 = vector.extract_strided_slice %53 {offsets = [0, 160], sizes = [16, 16], strides = [1, 1]} : vector<16x256xbf16> to vector<16x16xbf16>
    %103 = vector.shape_cast %102 : vector<16x16xbf16> to vector<1x16x16xbf16>
    %cst_36 = arith.constant dense<0.000000e+00> : vector<1x8x16xf32>
    %104 = tpu.matmul %99, %101, %cst_36 {dimension_numbers = #tpu.dot_dimension_numbers<[2], [2], [1], [1], [0, 0, 0, 1, 1, 1], [0], [0]>} : vector<1x8x16xbf16>, vector<1x16x16xbf16>, vector<1x8x16xf32> -> vector<1x8x16xf32>
    %cst_37 = arith.constant 2.500000e-01 : f32
    %105 = vector.broadcast %cst_37 : f32 to vector<1x8x16xf32>
    %106 = arith.mulf %105, %104 : vector<1x8x16xf32>
    %cst_38 = arith.constant dense<0xFF800000> : vector<1x8xf32>
    %107 = vector.multi_reduction <maximumf>, %106, %cst_38 [2] : vector<1x8x16xf32> to vector<1x8xf32>
    %108 = vector.shape_cast %107 : vector<1x8xf32> to vector<1x8x1xf32>
    %109 = vector.broadcast %108 : vector<1x8x1xf32> to vector<1x8x16xf32>
    %110 = arith.subf %106, %109 : vector<1x8x16xf32>
    %111 = math.exp %110 : vector<1x8x16xf32>
    %cst_39 = arith.constant dense<0.000000e+00> : vector<1x8xf32>
    %112 = vector.multi_reduction <add>, %111, %cst_39 [2] : vector<1x8x16xf32> to vector<1x8xf32>
    %113 = vector.shape_cast %112 : vector<1x8xf32> to vector<1x8x1xf32>
    %114 = tpu.reciprocal %113 {approx = true} : vector<1x8x1xf32> -> vector<1x8x1xf32>
    %115 = vector.broadcast %114 : vector<1x8x1xf32> to vector<1x8x16xf32>
    %116 = arith.mulf %111, %115 : vector<1x8x16xf32>
    %117 = arith.truncf %116 : vector<1x8x16xf32> to vector<1x8x16xbf16>
    %cst_40 = arith.constant dense<0.000000e+00> : vector<1x8x16xf32>
    %118 = tpu.matmul %117, %103, %cst_40 {dimension_numbers = #tpu.dot_dimension_numbers<[2], [1], [1], [2], [0, 0, 0, 1, 1, 2], [0], [0]>} : vector<1x8x16xbf16>, vector<1x16x16xbf16>, vector<1x8x16xf32> -> vector<1x8x16xf32>
    %119 = vector.shape_cast %118 : vector<1x8x16xf32> to vector<8x16xf32>
    %120 = vector.extract_strided_slice %49 {offsets = [0, 48], sizes = [8, 16], strides = [1, 1]} : vector<8x128xbf16> to vector<8x16xbf16>
    %121 = vector.shape_cast %120 : vector<8x16xbf16> to vector<1x8x16xbf16>
    %122 = vector.extract_strided_slice %53 {offsets = [0, 48], sizes = [16, 16], strides = [1, 1]} : vector<16x256xbf16> to vector<16x16xbf16>
    %123 = vector.shape_cast %122 : vector<16x16xbf16> to vector<1x16x16xbf16>
    %124 = vector.extract_strided_slice %53 {offsets = [0, 176], sizes = [16, 16], strides = [1, 1]} : vector<16x256xbf16> to vector<16x16xbf16>
    %125 = vector.shape_cast %124 : vector<16x16xbf16> to vector<1x16x16xbf16>
    %cst_41 = arith.constant dense<0.000000e+00> : vector<1x8x16xf32>
    %126 = tpu.matmul %121, %123, %cst_41 {dimension_numbers = #tpu.dot_dimension_numbers<[2], [2], [1], [1], [0, 0, 0, 1, 1, 1], [0], [0]>} : vector<1x8x16xbf16>, vector<1x16x16xbf16>, vector<1x8x16xf32> -> vector<1x8x16xf32>
    %cst_42 = arith.constant 2.500000e-01 : f32
    %127 = vector.broadcast %cst_42 : f32 to vector<1x8x16xf32>
    %128 = arith.mulf %127, %126 : vector<1x8x16xf32>
    %cst_43 = arith.constant dense<0xFF800000> : vector<1x8xf32>
    %129 = vector.multi_reduction <maximumf>, %128, %cst_43 [2] : vector<1x8x16xf32> to vector<1x8xf32>
    %130 = vector.shape_cast %129 : vector<1x8xf32> to vector<1x8x1xf32>
    %131 = vector.broadcast %130 : vector<1x8x1xf32> to vector<1x8x16xf32>
    %132 = arith.subf %128, %131 : vector<1x8x16xf32>
    %133 = math.exp %132 : vector<1x8x16xf32>
    %cst_44 = arith.constant dense<0.000000e+00> : vector<1x8xf32>
    %134 = vector.multi_reduction <add>, %133, %cst_44 [2] : vector<1x8x16xf32> to vector<1x8xf32>
    %135 = vector.shape_cast %134 : vector<1x8xf32> to vector<1x8x1xf32>
    %136 = tpu.reciprocal %135 {approx = true} : vector<1x8x1xf32> -> vector<1x8x1xf32>
    %137 = vector.broadcast %136 : vector<1x8x1xf32> to vector<1x8x16xf32>
    %138 = arith.mulf %133, %137 : vector<1x8x16xf32>
    %139 = arith.truncf %138 : vector<1x8x16xf32> to vector<1x8x16xbf16>
    %cst_45 = arith.constant dense<0.000000e+00> : vector<1x8x16xf32>
    %140 = tpu.matmul %139, %125, %cst_45 {dimension_numbers = #tpu.dot_dimension_numbers<[2], [1], [1], [2], [0, 0, 0, 1, 1, 2], [0], [0]>} : vector<1x8x16xbf16>, vector<1x16x16xbf16>, vector<1x8x16xf32> -> vector<1x8x16xf32>
    %141 = vector.shape_cast %140 : vector<1x8x16xf32> to vector<8x16xf32>
    %142 = vector.extract_strided_slice %49 {offsets = [0, 64], sizes = [8, 16], strides = [1, 1]} : vector<8x128xbf16> to vector<8x16xbf16>
    %143 = vector.shape_cast %142 : vector<8x16xbf16> to vector<1x8x16xbf16>
    %144 = vector.extract_strided_slice %53 {offsets = [0, 64], sizes = [16, 16], strides = [1, 1]} : vector<16x256xbf16> to vector<16x16xbf16>
    %145 = vector.shape_cast %144 : vector<16x16xbf16> to vector<1x16x16xbf16>
    %146 = vector.extract_strided_slice %53 {offsets = [0, 192], sizes = [16, 16], strides = [1, 1]} : vector<16x256xbf16> to vector<16x16xbf16>
    %147 = vector.shape_cast %146 : vector<16x16xbf16> to vector<1x16x16xbf16>
    %cst_46 = arith.constant dense<0.000000e+00> : vector<1x8x16xf32>
    %148 = tpu.matmul %143, %145, %cst_46 {dimension_numbers = #tpu.dot_dimension_numbers<[2], [2], [1], [1], [0, 0, 0, 1, 1, 1], [0], [0]>} : vector<1x8x16xbf16>, vector<1x16x16xbf16>, vector<1x8x16xf32> -> vector<1x8x16xf32>
    %cst_47 = arith.constant 2.500000e-01 : f32
    %149 = vector.broadcast %cst_47 : f32 to vector<1x8x16xf32>
    %150 = arith.mulf %149, %148 : vector<1x8x16xf32>
    %cst_48 = arith.constant dense<0xFF800000> : vector<1x8xf32>
    %151 = vector.multi_reduction <maximumf>, %150, %cst_48 [2] : vector<1x8x16xf32> to vector<1x8xf32>
    %152 = vector.shape_cast %151 : vector<1x8xf32> to vector<1x8x1xf32>
    %153 = vector.broadcast %152 : vector<1x8x1xf32> to vector<1x8x16xf32>
    %154 = arith.subf %150, %153 : vector<1x8x16xf32>
    %155 = math.exp %154 : vector<1x8x16xf32>
    %cst_49 = arith.constant dense<0.000000e+00> : vector<1x8xf32>
    %156 = vector.multi_reduction <add>, %155, %cst_49 [2] : vector<1x8x16xf32> to vector<1x8xf32>
    %157 = vector.shape_cast %156 : vector<1x8xf32> to vector<1x8x1xf32>
    %158 = tpu.reciprocal %157 {approx = true} : vector<1x8x1xf32> -> vector<1x8x1xf32>
    %159 = vector.broadcast %158 : vector<1x8x1xf32> to vector<1x8x16xf32>
    %160 = arith.mulf %155, %159 : vector<1x8x16xf32>
    %161 = arith.truncf %160 : vector<1x8x16xf32> to vector<1x8x16xbf16>
    %cst_50 = arith.constant dense<0.000000e+00> : vector<1x8x16xf32>
    %162 = tpu.matmul %161, %147, %cst_50 {dimension_numbers = #tpu.dot_dimension_numbers<[2], [1], [1], [2], [0, 0, 0, 1, 1, 2], [0], [0]>} : vector<1x8x16xbf16>, vector<1x16x16xbf16>, vector<1x8x16xf32> -> vector<1x8x16xf32>
    %163 = vector.shape_cast %162 : vector<1x8x16xf32> to vector<8x16xf32>
    %164 = vector.extract_strided_slice %49 {offsets = [0, 80], sizes = [8, 16], strides = [1, 1]} : vector<8x128xbf16> to vector<8x16xbf16>
    %165 = vector.shape_cast %164 : vector<8x16xbf16> to vector<1x8x16xbf16>
    %166 = vector.extract_strided_slice %53 {offsets = [0, 80], sizes = [16, 16], strides = [1, 1]} : vector<16x256xbf16> to vector<16x16xbf16>
    %167 = vector.shape_cast %166 : vector<16x16xbf16> to vector<1x16x16xbf16>
    %168 = vector.extract_strided_slice %53 {offsets = [0, 208], sizes = [16, 16], strides = [1, 1]} : vector<16x256xbf16> to vector<16x16xbf16>
    %169 = vector.shape_cast %168 : vector<16x16xbf16> to vector<1x16x16xbf16>
    %cst_51 = arith.constant dense<0.000000e+00> : vector<1x8x16xf32>
    %170 = tpu.matmul %165, %167, %cst_51 {dimension_numbers = #tpu.dot_dimension_numbers<[2], [2], [1], [1], [0, 0, 0, 1, 1, 1], [0], [0]>} : vector<1x8x16xbf16>, vector<1x16x16xbf16>, vector<1x8x16xf32> -> vector<1x8x16xf32>
    %cst_52 = arith.constant 2.500000e-01 : f32
    %171 = vector.broadcast %cst_52 : f32 to vector<1x8x16xf32>
    %172 = arith.mulf %171, %170 : vector<1x8x16xf32>
    %cst_53 = arith.constant dense<0xFF800000> : vector<1x8xf32>
    %173 = vector.multi_reduction <maximumf>, %172, %cst_53 [2] : vector<1x8x16xf32> to vector<1x8xf32>
    %174 = vector.shape_cast %173 : vector<1x8xf32> to vector<1x8x1xf32>
    %175 = vector.broadcast %174 : vector<1x8x1xf32> to vector<1x8x16xf32>
    %176 = arith.subf %172, %175 : vector<1x8x16xf32>
    %177 = math.exp %176 : vector<1x8x16xf32>
    %cst_54 = arith.constant dense<0.000000e+00> : vector<1x8xf32>
    %178 = vector.multi_reduction <add>, %177, %cst_54 [2] : vector<1x8x16xf32> to vector<1x8xf32>
    %179 = vector.shape_cast %178 : vector<1x8xf32> to vector<1x8x1xf32>
    %180 = tpu.reciprocal %179 {approx = true} : vector<1x8x1xf32> -> vector<1x8x1xf32>
    %181 = vector.broadcast %180 : vector<1x8x1xf32> to vector<1x8x16xf32>
    %182 = arith.mulf %177, %181 : vector<1x8x16xf32>
    %183 = arith.truncf %182 : vector<1x8x16xf32> to vector<1x8x16xbf16>
    %cst_55 = arith.constant dense<0.000000e+00> : vector<1x8x16xf32>
    %184 = tpu.matmul %183, %169, %cst_55 {dimension_numbers = #tpu.dot_dimension_numbers<[2], [1], [1], [2], [0, 0, 0, 1, 1, 2], [0], [0]>} : vector<1x8x16xbf16>, vector<1x16x16xbf16>, vector<1x8x16xf32> -> vector<1x8x16xf32>
    %185 = vector.shape_cast %184 : vector<1x8x16xf32> to vector<8x16xf32>
    %186 = vector.extract_strided_slice %49 {offsets = [0, 96], sizes = [8, 16], strides = [1, 1]} : vector<8x128xbf16> to vector<8x16xbf16>
    %187 = vector.shape_cast %186 : vector<8x16xbf16> to vector<1x8x16xbf16>
    %188 = vector.extract_strided_slice %53 {offsets = [0, 96], sizes = [16, 16], strides = [1, 1]} : vector<16x256xbf16> to vector<16x16xbf16>
    %189 = vector.shape_cast %188 : vector<16x16xbf16> to vector<1x16x16xbf16>
    %190 = vector.extract_strided_slice %53 {offsets = [0, 224], sizes = [16, 16], strides = [1, 1]} : vector<16x256xbf16> to vector<16x16xbf16>
    %191 = vector.shape_cast %190 : vector<16x16xbf16> to vector<1x16x16xbf16>
    %cst_56 = arith.constant dense<0.000000e+00> : vector<1x8x16xf32>
    %192 = tpu.matmul %187, %189, %cst_56 {dimension_numbers = #tpu.dot_dimension_numbers<[2], [2], [1], [1], [0, 0, 0, 1, 1, 1], [0], [0]>} : vector<1x8x16xbf16>, vector<1x16x16xbf16>, vector<1x8x16xf32> -> vector<1x8x16xf32>
    %cst_57 = arith.constant 2.500000e-01 : f32
    %193 = vector.broadcast %cst_57 : f32 to vector<1x8x16xf32>
    %194 = arith.mulf %193, %192 : vector<1x8x16xf32>
    %cst_58 = arith.constant dense<0xFF800000> : vector<1x8xf32>
    %195 = vector.multi_reduction <maximumf>, %194, %cst_58 [2] : vector<1x8x16xf32> to vector<1x8xf32>
    %196 = vector.shape_cast %195 : vector<1x8xf32> to vector<1x8x1xf32>
    %197 = vector.broadcast %196 : vector<1x8x1xf32> to vector<1x8x16xf32>
    %198 = arith.subf %194, %197 : vector<1x8x16xf32>
    %199 = math.exp %198 : vector<1x8x16xf32>
    %cst_59 = arith.constant dense<0.000000e+00> : vector<1x8xf32>
    %200 = vector.multi_reduction <add>, %199, %cst_59 [2] : vector<1x8x16xf32> to vector<1x8xf32>
    %201 = vector.shape_cast %200 : vector<1x8xf32> to vector<1x8x1xf32>
    %202 = tpu.reciprocal %201 {approx = true} : vector<1x8x1xf32> -> vector<1x8x1xf32>
    %203 = vector.broadcast %202 : vector<1x8x1xf32> to vector<1x8x16xf32>
    %204 = arith.mulf %199, %203 : vector<1x8x16xf32>
    %205 = arith.truncf %204 : vector<1x8x16xf32> to vector<1x8x16xbf16>
    %cst_60 = arith.constant dense<0.000000e+00> : vector<1x8x16xf32>
    %206 = tpu.matmul %205, %191, %cst_60 {dimension_numbers = #tpu.dot_dimension_numbers<[2], [1], [1], [2], [0, 0, 0, 1, 1, 2], [0], [0]>} : vector<1x8x16xbf16>, vector<1x16x16xbf16>, vector<1x8x16xf32> -> vector<1x8x16xf32>
    %207 = vector.shape_cast %206 : vector<1x8x16xf32> to vector<8x16xf32>
    %208 = vector.extract_strided_slice %49 {offsets = [0, 112], sizes = [8, 16], strides = [1, 1]} : vector<8x128xbf16> to vector<8x16xbf16>
    %209 = vector.shape_cast %208 : vector<8x16xbf16> to vector<1x8x16xbf16>
    %210 = vector.extract_strided_slice %53 {offsets = [0, 112], sizes = [16, 16], strides = [1, 1]} : vector<16x256xbf16> to vector<16x16xbf16>
    %211 = vector.shape_cast %210 : vector<16x16xbf16> to vector<1x16x16xbf16>
    %212 = vector.extract_strided_slice %53 {offsets = [0, 240], sizes = [16, 16], strides = [1, 1]} : vector<16x256xbf16> to vector<16x16xbf16>
    %213 = vector.shape_cast %212 : vector<16x16xbf16> to vector<1x16x16xbf16>
    %cst_61 = arith.constant dense<0.000000e+00> : vector<1x8x16xf32>
    %214 = tpu.matmul %209, %211, %cst_61 {dimension_numbers = #tpu.dot_dimension_numbers<[2], [2], [1], [1], [0, 0, 0, 1, 1, 1], [0], [0]>} : vector<1x8x16xbf16>, vector<1x16x16xbf16>, vector<1x8x16xf32> -> vector<1x8x16xf32>
    %cst_62 = arith.constant 2.500000e-01 : f32
    %215 = vector.broadcast %cst_62 : f32 to vector<1x8x16xf32>
    %216 = arith.mulf %215, %214 : vector<1x8x16xf32>
    %cst_63 = arith.constant dense<0xFF800000> : vector<1x8xf32>
    %217 = vector.multi_reduction <maximumf>, %216, %cst_63 [2] : vector<1x8x16xf32> to vector<1x8xf32>
    %218 = vector.shape_cast %217 : vector<1x8xf32> to vector<1x8x1xf32>
    %219 = vector.broadcast %218 : vector<1x8x1xf32> to vector<1x8x16xf32>
    %220 = arith.subf %216, %219 : vector<1x8x16xf32>
    %221 = math.exp %220 : vector<1x8x16xf32>
    %cst_64 = arith.constant dense<0.000000e+00> : vector<1x8xf32>
    %222 = vector.multi_reduction <add>, %221, %cst_64 [2] : vector<1x8x16xf32> to vector<1x8xf32>
    %223 = vector.shape_cast %222 : vector<1x8xf32> to vector<1x8x1xf32>
    %224 = tpu.reciprocal %223 {approx = true} : vector<1x8x1xf32> -> vector<1x8x1xf32>
    %225 = vector.broadcast %224 : vector<1x8x1xf32> to vector<1x8x16xf32>
    %226 = arith.mulf %221, %225 : vector<1x8x16xf32>
    %227 = arith.truncf %226 : vector<1x8x16xf32> to vector<1x8x16xbf16>
    %cst_65 = arith.constant dense<0.000000e+00> : vector<1x8x16xf32>
    %228 = tpu.matmul %227, %213, %cst_65 {dimension_numbers = #tpu.dot_dimension_numbers<[2], [1], [1], [2], [0, 0, 0, 1, 1, 2], [0], [0]>} : vector<1x8x16xbf16>, vector<1x16x16xbf16>, vector<1x8x16xf32> -> vector<1x8x16xf32>
    %229 = vector.shape_cast %228 : vector<1x8x16xf32> to vector<8x16xf32>
    %230 = tpu.concatenate %75, %97, %119, %141, %163, %185, %207, %229 in 1 : vector<8x16xf32>, vector<8x16xf32>, vector<8x16xf32>, vector<8x16xf32>, vector<8x16xf32>, vector<8x16xf32>, vector<8x16xf32>, vector<8x16xf32> -> vector<8x128xf32>
    %231 = arith.truncf %230 : vector<8x128xf32> to vector<8x128xbf16>
    %c0_66 = arith.constant 0 : index
    %c0_67 = arith.constant 0 : index
    %232 = vector.load %arg5[%c0_66, %c0_67] : memref<128x128xbf16, #tpu.memory_space<vmem>>, vector<128x128xbf16>
    %cst_68 = arith.constant dense<0.000000e+00> : vector<8x128xf32>
    %233 = tpu.matmul %231, %232, %cst_68 {dimension_numbers = #tpu.dot_dimension_numbers<[1], [0], [0], [1], [0, 0, 1, 1], [], []>} : vector<8x128xbf16>, vector<128x128xbf16>, vector<8x128xf32> -> vector<8x128xf32>
    %234 = arith.addf %233, %0 : vector<8x128xf32>
    %c0_69 = arith.constant 0 : index
    %c0_70 = arith.constant 0 : index
    %235 = vector.load %arg8[%c0_69, %c0_70] : memref<1x128xf32, #tpu.memory_space<vmem>>, vector<1x128xf32>
    %c0_71 = arith.constant 0 : index
    %c0_72 = arith.constant 0 : index
    %236 = vector.load %arg9[%c0_71, %c0_72] : memref<1x128xf32, #tpu.memory_space<vmem>>, vector<1x128xf32>
    %cst_73 = arith.constant dense<0.000000e+00> : vector<8xf32>
    %237 = vector.multi_reduction <add>, %234, %cst_73 [1] : vector<8x128xf32> to vector<8xf32>
    %238 = vector.shape_cast %237 : vector<8xf32> to vector<8x1xf32>
    %cst_74 = arith.constant 1.280000e+02 : f32
    %239 = vector.broadcast %cst_74 : f32 to vector<8x1xf32>
    %240 = arith.divf %238, %239 : vector<8x1xf32>
    %241 = vector.broadcast %240 : vector<8x1xf32> to vector<8x128xf32>
    %242 = arith.subf %234, %241 : vector<8x128xf32>
    %243 = arith.mulf %242, %242 : vector<8x128xf32>
    %cst_75 = arith.constant dense<0.000000e+00> : vector<8xf32>
    %244 = vector.multi_reduction <add>, %243, %cst_75 [1] : vector<8x128xf32> to vector<8xf32>
    %245 = vector.shape_cast %244 : vector<8xf32> to vector<8x1xf32>
    %cst_76 = arith.constant 1.280000e+02 : f32
    %246 = vector.broadcast %cst_76 : f32 to vector<8x1xf32>
    %247 = arith.divf %245, %246 : vector<8x1xf32>
    %cst_77 = arith.constant 9.99999974E-6 : f32
    %248 = vector.broadcast %cst_77 : f32 to vector<8x1xf32>
    %249 = arith.addf %247, %248 : vector<8x1xf32>
    %250 = math.rsqrt %249 : vector<8x1xf32>
    %251 = vector.broadcast %250 : vector<8x1xf32> to vector<8x128xf32>
    %252 = arith.mulf %242, %251 : vector<8x128xf32>
    %253 = vector.broadcast %235 : vector<1x128xf32> to vector<8x128xf32>
    %254 = arith.mulf %252, %253 : vector<8x128xf32>
    %255 = vector.broadcast %236 : vector<1x128xf32> to vector<8x128xf32>
    %256 = arith.addf %254, %255 : vector<8x128xf32>
    %257 = arith.truncf %256 : vector<8x128xf32> to vector<8x128xbf16>
    %c0_78 = arith.constant 0 : index
    %c0_79 = arith.constant 0 : index
    %258 = vector.load %arg10[%c0_78, %c0_79] : memref<128x512xbf16, #tpu.memory_space<vmem>>, vector<128x512xbf16>
    %cst_80 = arith.constant dense<0.000000e+00> : vector<8x512xf32>
    %259 = tpu.matmul %257, %258, %cst_80 {dimension_numbers = #tpu.dot_dimension_numbers<[1], [0], [0], [1], [0, 0, 1, 1], [], []>} : vector<8x128xbf16>, vector<128x512xbf16>, vector<8x512xf32> -> vector<8x512xf32>
    %c0_81 = arith.constant 0 : index
    %c0_82 = arith.constant 0 : index
    %260 = vector.load %arg11[%c0_81, %c0_82] : memref<1x512xf32, #tpu.memory_space<vmem>>, vector<1x512xf32>
    %261 = vector.broadcast %260 : vector<1x512xf32> to vector<8x512xf32>
    %262 = arith.addf %259, %261 : vector<8x512xf32>
    %cst_83 = arith.constant 0.000000e+00 : f32
    %263 = vector.broadcast %cst_83 : f32 to vector<8x512xf32>
    %264 = arith.maximumf %262, %263 : vector<8x512xf32>
    %265 = arith.truncf %264 : vector<8x512xf32> to vector<8x512xbf16>
    %c0_84 = arith.constant 0 : index
    %c0_85 = arith.constant 0 : index
    %266 = vector.load %arg12[%c0_84, %c0_85] : memref<512x128xbf16, #tpu.memory_space<vmem>>, vector<512x128xbf16>
    %cst_86 = arith.constant dense<0.000000e+00> : vector<8x128xf32>
    %267 = tpu.matmul %265, %266, %cst_86 {dimension_numbers = #tpu.dot_dimension_numbers<[1], [0], [0], [1], [0, 0, 1, 1], [], []>} : vector<8x512xbf16>, vector<512x128xbf16>, vector<8x128xf32> -> vector<8x128xf32>
    %c0_87 = arith.constant 0 : index
    %c0_88 = arith.constant 0 : index
    %268 = vector.load %arg13[%c0_87, %c0_88] : memref<1x128xf32, #tpu.memory_space<vmem>>, vector<1x128xf32>
    %269 = vector.broadcast %268 : vector<1x128xf32> to vector<8x128xf32>
    %270 = arith.addf %267, %269 : vector<8x128xf32>
    %271 = arith.addf %270, %234 : vector<8x128xf32>
    %c0_89 = arith.constant 0 : index
    %c0_90 = arith.constant 0 : index
    %272 = vector.load %arg14[%c0_89, %c0_90] : memref<8x128xf32, #tpu.memory_space<vmem>>, vector<8x128xf32>
    tpu.vector_store %arg14[%c0_89, %c0_90], %271 {strides = array<i32>} : memref<8x128xf32, #tpu.memory_space<vmem>>, vector<8x128xf32>,
    return
  }
  func.func @transform_0(%arg0: i32) -> (i32, i32) {
    %c0_i32 = arith.constant 0 : i32
    %c0_i32_0 = arith.constant 0 : i32
    return %arg0, %c0_i32 : i32, i32
  }
  func.func @transform_1(%arg0: i32) -> (i32, i32) {
    %c0_i32 = arith.constant 0 : i32
    %c0_i32_0 = arith.constant 0 : i32
    return %arg0, %c0_i32 : i32, i32
  }
  func.func @transform_2(%arg0: i32) -> (i32, i32) {
    %c0_i32 = arith.constant 0 : i32
    %c0_i32_0 = arith.constant 0 : i32
    %c0_i32_1 = arith.constant 0 : i32
    return %c0_i32, %c0_i32_0 : i32, i32
  }
  func.func @transform_3(%arg0: i32) -> (i32, i32) {
    %c0_i32 = arith.constant 0 : i32
    %c0_i32_0 = arith.constant 0 : i32
    %c0_i32_1 = arith.constant 0 : i32
    return %c0_i32, %c0_i32_0 : i32, i32
  }
  func.func @transform_4(%arg0: i32) -> (i32, i32) {
    %c0_i32 = arith.constant 0 : i32
    %c0_i32_0 = arith.constant 0 : i32
    %c0_i32_1 = arith.constant 0 : i32
    return %c0_i32, %c0_i32_0 : i32, i32
  }
  func.func @transform_5(%arg0: i32) -> (i32, i32) {
    %c0_i32 = arith.constant 0 : i32
    %c0_i32_0 = arith.constant 0 : i32
    %c0_i32_1 = arith.constant 0 : i32
    return %c0_i32, %c0_i32_0 : i32, i32
  }
  func.func @transform_6(%arg0: i32) -> (i32, i32) {
    %c0_i32 = arith.constant 0 : i32
    %c0_i32_0 = arith.constant 0 : i32
    %c0_i32_1 = arith.constant 0 : i32
    return %c0_i32, %c0_i32_0 : i32, i32
  }
  func.func @transform_7(%arg0: i32) -> (i32, i32) {
    %c0_i32 = arith.constant 0 : i32
    %c0_i32_0 = arith.constant 0 : i32
    %c0_i32_1 = arith.constant 0 : i32
    return %c0_i32, %c0_i32_0 : i32, i32
  }
  func.func @transform_8(%arg0: i32) -> (i32, i32) {
    %c0_i32 = arith.constant 0 : i32
    %c0_i32_0 = arith.constant 0 : i32
    %c0_i32_1 = arith.constant 0 : i32
    return %c0_i32, %c0_i32_0 : i32, i32
  }
  func.func @transform_9(%arg0: i32) -> (i32, i32) {
    %c0_i32 = arith.constant 0 : i32
    %c0_i32_0 = arith.constant 0 : i32
    %c0_i32_1 = arith.constant 0 : i32
    return %c0_i32, %c0_i32_0 : i32, i32
  }
  func.func @transform_10(%arg0: i32) -> (i32, i32) {
    %c0_i32 = arith.constant 0 : i32
    %c0_i32_0 = arith.constant 0 : i32
    %c0_i32_1 = arith.constant 0 : i32
    return %c0_i32, %c0_i32_0 : i32, i32
  }
  func.func @transform_11(%arg0: i32) -> (i32, i32) {
    %c0_i32 = arith.constant 0 : i32
    %c0_i32_0 = arith.constant 0 : i32
    %c0_i32_1 = arith.constant 0 : i32
    return %c0_i32, %c0_i32_0 : i32, i32
  }
  func.func @transform_12(%arg0: i32) -> (i32, i32) {
    %c0_i32 = arith.constant 0 : i32
    %c0_i32_0 = arith.constant 0 : i32
    %c0_i32_1 = arith.constant 0 : i32
    return %c0_i32, %c0_i32_0 : i32, i32
  }
  func.func @transform_13(%arg0: i32) -> (i32, i32) {
    %c0_i32 = arith.constant 0 : i32
    %c0_i32_0 = arith.constant 0 : i32
    return %arg0, %c0_i32 : i32, i32
  }
}

</mosaic_0001>

<bundles_post_ra>
// kernel: tpu_custom_call.1
= control target key start
LH: loop header
LB: loop body
LE: loop exit
PB: predicated region body
PF: predicated region fallthrough
CT: control target
= control target key end

     0   :  { %s4326_s0 = inlined_call_operand.hbm [shape: f32[16,128], index: 0, kind: input, shape index: {}]   ;;  %s4327_s1 = inlined_call_operand.hbm [shape: f32[32,128], index: 1, kind: input, shape index: {}]   ;;  %s4328_s2 = inlined_call_operand.hbm [shape: bf16[128,128], index: 2, kind: input, shape index: {}]   ;;  %s4329_s3 = inlined_call_operand.hbm [shape: bf16[128,256], index: 3, kind: input, shape index: {}]   ;;  %s4330_s4 = inlined_call_operand.hbm [shape: bf16[128,128], index: 4, kind: input, shape index: {}]   ;;  %s4331_s5 = inlined_call_operand.vmem [shape: f32[1,128], index: 5, kind: input, shape index: {}]   ;;  %s4332_s6 = inlined_call_operand.vmem [shape: f32[1,128], index: 6, kind: input, shape index: {}]   ;;  %s4333_s7 = inlined_call_operand.vmem [shape: f32[1,128], index: 7, kind: input, shape index: {}]   ;;  %s4334_s8 = inlined_call_operand.vmem [shape: f32[1,128], index: 8, kind: input, shape index: {}]   ;;  %s4335_s9 = inlined_call_operand.hbm [shape: bf16[128,512], index: 9, kind: input, shape index: {}]   ;;  %s4336_s10 = inlined_call_operand.vmem [shape: f32[1,512], index: 10, kind: input, shape index: {}]   ;;  %s4337_s11 = inlined_call_operand.hbm [shape: bf16[512,128], index: 11, kind: input, shape index: {}]   ;;  %s4338_s12 = inlined_call_operand.vmem [shape: f32[1,128], index: 12, kind: input, shape index: {}]   ;;  %s4339_s13 = inlined_call_operand.hbm [shape: f32[16,128], index: 13, kind: output, shape index: {}]  }
   0x1   :  { %4350 = sst [smem:[#allocation21_spill]] %s4326_s0 }
   0x2   :  { %4351 = sst [smem:[#allocation22_spill]] %s4328_s2 }
   0x3   :  { %4352 = sst [smem:[#allocation23_spill]] %s4329_s3 }
   0x4   :  { %4353 = sst [smem:[#allocation24_spill]] %s4330_s4 }
   0x5   :  { %4354 = sst [smem:[#allocation25_spill]] %s4333_s7 }
   0x6   :  { %4355 = sst [smem:[#allocation26_spill]] %s4334_s8 }
   0x7   :  { %4356 = sst [smem:[#allocation27_spill]] %s4336_s10 }
   0x8   :  { %4357 = sst [smem:[#allocation28_spill]] %s4338_s12 }
   0x9   :  { %4358 = sst [smem:[#allocation29_spill]] %s4339_s13 }
   0xa   :  { %18 = vsyncpa [#allocation3], 0 }
   0xb   :  { %20 = vsyncpa [#allocation3 + $0x1], 0 }
   0xc   :  { %21 = vsyncpa [#allocation6], 0 }
   0xd   :  { %23 = vsyncpa [#allocation6 + $0x1], 0 }
   0xe   :  { %24 = vsyncpa [#allocation9], 0 }
   0xf   :  { %25 = vsyncpa [#allocation12], 0 }
  0x10   :  { %26 = vsyncpa [#allocation4], 0 }
  0x11   :  { %28 = vsyncpa [#allocation4 + $0x1], 0  ;;  %s3752_s25 = smov 0   ;;  %s3754_s26 = smov 0  }
  0x12   :  { %s3756_s27 = smov 0   ;;  %s3758_s28 = smov 0  }
  0x13 LB: > { %s3658_s29 = smov [#allocation7]   ;;  %s3773_s14 = sadd.s32 4294967295, %s3656_s28   ;;  %s3656_s28 = sphi %s3758_s28, %s4393_s28   ;;  %s3652_s27 = sphi %s3756_s27, %s4392_s27   ;;  %s3648_s26 = sphi %s3754_s26, %s4391_s26   ;;  %s3644_s25 = sphi %s3752_s25, %s4390_s25  }
  0x14   : > { %s360_s30 = sshll.u32 %s3658_s29, 4  ;;  %p2722_p0 = scmp.ge.s32.totalorder %s3656_s28, 1  ;;  %s3778_s30 = int_to_ptr.vmem [resolvable:$true] %s360_s30 }
  0x15   : > { %p4343_p1 = scmp.eq.s32.totalorder %s3773_s14, 0  ;;  %p348_p2 = scmp.lt.s32.totalorder %s3656_s28, 3 }
  0x16   : > { %s3659_s16 = smov [#allocation8]   ;;  %s3660_s19 = smov [#allocation11]  }
  0x17   : > { %p3780_p3 = pnand %p2722_p0, %p348_p2  ;;  %s373_s17 = sshll.u32 %s3659_s16, 4  ;;  %s3793_s17 = int_to_ptr.vmem [resolvable:$true] %s373_s17 }
  0x18   : > { %s3795_s20 = sshll.u32 %s3660_s19, 4  ;;  %s4361_s2 = sld [smem:[#allocation22_spill]]  ;;  %s412_s20 = int_to_ptr.vmem [resolvable:$true] %s3795_s20 }
  0x19   : > { %s4359_s15 = scalar_select %p3780_p3, 1, 0 }
  0x1a   : > { %p3121_p5 = pneg %p3780_p3 }
  0x1c   : > { %p3789_p6 = pnand %p3121_p5, %p4343_p1 }
  0x1e   : > { %s3374_s23 = scalar_lea.hbm %s4361_s2, 1024  ;;  %p3805_p8 = pneg %p3789_p6 }
  0x1f   : > { %p3375_p7 = scmp.ne.s32.totalorder %s4361_s2, %s3374_s23  ;;  %p3381_p11 = scmp.lt.u32.totalorder %s3374_s23, %s4361_s2 }
  0x21   : > { %p3377_p9 = pnand %p3805_p8, %p3375_p7 }
  0x23   : > { %p3378_p10 = pneg %p3377_p9 }
  0x25   : > { %p3383_p12 = pnand %p3381_p11, %p3378_p10 }
  0x27   : > { %3386 = shalt.err (!%p3383_p12)
}
  0x28   : > { %s3387_s21 = scalar_lea.vmem %s3778_s30, 1024  ;;  %p3395_p5 = scmp.lt.s32.totalorder %s3778_s30, %s3778_s30 }
  0x29   : > { %p3388_p13 = scmp.ne.s32.totalorder %s3778_s30, %s3387_s21  ;;  %p3396_p4 = scmp.lt.s32.totalorder %s3387_s21, %s3387_s21 }
  0x2b   : > { %p3390_p0 = pnand %p3388_p13, %p3805_p8  ;;  %p3397_p7 = por %p3396_p4, %p3395_p5 }
  0x2d   : > { %p3391_p2 = pneg %p3390_p0 }
  0x2f   : > { %p3398_p9 = pnand %p3397_p7, %p3391_p2 }
  0x31   : > { %3401 = shalt.err (!%p3398_p9)
}
  0x32   : > { %s4341_s22 = smov 64   ;;  %s4347_s13 = smov 4  }
  0x33   : > { %3124 = dma.hbm_to_vmem [thread:$0]  (!%p3789_p6), %s4361_s2, 1024, %s3778_s30, [#allocation6], %s4341_s22, %s4341_s22, %s4347_s13  }
  0x34   : > { %s4363_s3 = sld [smem:[#allocation23_spill]] }
  0x3a   : > { %s3402_s21 = scalar_lea.hbm %s4363_s3, 2048 }
  0x3b   : > { %p3403_p4 = scmp.ne.s32.totalorder %s4363_s3, %s3402_s21  ;;  %p3409_p12 = scmp.lt.u32.totalorder %s3402_s21, %s4363_s3 }
  0x3d   : > { %p3405_p10 = pnand %p3403_p4, %p3805_p8 }
  0x3f   : > { %p3406_p11 = pneg %p3405_p10 }
  0x41   : > { %p3411_p13 = pnand %p3409_p12, %p3406_p11 }
  0x43   : > { %3414 = shalt.err (!%p3411_p13)
}
  0x44   : > { %s3415_s30 = scalar_lea.vmem %s3793_s17, 2048  ;;  %p3423_p7 = scmp.lt.s32.totalorder %s3793_s17, %s3793_s17 }
  0x45   : > { %p3416_p0 = scmp.ne.s32.totalorder %s3793_s17, %s3415_s30  ;;  %p3424_p9 = scmp.lt.s32.totalorder %s3415_s30, %s3415_s30 }
  0x47   : > { %p3418_p2 = pnand %p3416_p0, %p3805_p8  ;;  %p3425_p4 = por %p3424_p9, %p3423_p7 }
  0x49   : > { %p3419_p5 = pneg %p3418_p2 }
  0x4b   : > { %p3426_p10 = pnand %p3425_p4, %p3419_p5 }
  0x4d   : > { %3429 = shalt.err (!%p3426_p10)
}
  0x4e   : > { %s4345_s10 = smov 128   ;;  %s4346_s7 = smov 8  }
  0x4f   : > { %3127 = dma.hbm_to_vmem [thread:$0]  (!%p3789_p6), %s4363_s3, 2048, %s3793_s17, [#allocation9], %s4345_s10, %s4345_s10, %s4346_s7  }
  0x50   : > { %s3430_s29 = scalar_lea.hbm %s4335_s9, 4096 }
  0x51   : > { %p3431_p11 = scmp.ne.s32.totalorder %s4335_s9, %s3430_s29  ;;  %p3437_p0 = scmp.lt.u32.totalorder %s3430_s29, %s4335_s9 }
  0x53   : > { %p3433_p12 = pnand %p3431_p11, %p3805_p8 }
  0x55   : > { %p3434_p13 = pneg %p3433_p12 }
  0x57   : > { %p3439_p2 = pnand %p3437_p0, %p3434_p13 }
  0x59   : > { %3442 = shalt.err (!%p3439_p2)
}
  0x5a   : > { %s3443_s8 = scalar_lea.vmem %s412_s20, 4096  ;;  %p3451_p4 = scmp.lt.s32.totalorder %s412_s20, %s412_s20 }
  0x5b   : > { %p3444_p5 = scmp.ne.s32.totalorder %s412_s20, %s3443_s8  ;;  %p3452_p10 = scmp.lt.s32.totalorder %s3443_s8, %s3443_s8 }
  0x5d   : > { %p3446_p7 = pnand %p3444_p5, %p3805_p8  ;;  %p3453_p1 = por %p3452_p10, %p3451_p4 }
  0x5f   : > { %p3447_p9 = pneg %p3446_p7 }
  0x61   : > { %p3454_p3 = pnand %p3453_p1, %p3447_p9 }
  0x63   : > { %3457 = shalt.err (!%p3454_p3)
}
  0x64   : > { %s3665_s17 = smov 256   ;;  %s3666_s12 = smov 16  }
  0x65   : > { %3133 = dma.hbm_to_vmem [thread:$0]  (!%p3789_p6), %s4335_s9, 4096, %s412_s20, [#allocation12], %s3665_s17, %s3665_s17, %s3666_s12  }
  0x66   : > { %s3667_s24 = smov [#allocation10]   ;;  %s3668_s19 = smov [#allocation13]  }
  0x67   : > { %s386_s29 = sshll.u32 %s3667_s24, 4  ;;  %s427_s21 = sshll.u32 %s3668_s19, 4  ;;  %s387_s29 = int_to_ptr.vmem [resolvable:$true] %s386_s29  ;;  %s428_s21 = int_to_ptr.vmem [resolvable:$true] %s427_s21 }
  0x68   : > { %s4364_s4 = sld [smem:[#allocation24_spill]] }
  0x6e   : > { %s3458_s8 = scalar_lea.hbm %s4364_s4, 1024 }
  0x6f   : > { %p3459_p1 = scmp.ne.s32.totalorder %s4364_s4, %s3458_s8  ;;  %p3465_p12 = scmp.lt.u32.totalorder %s3458_s8, %s4364_s4 }
  0x71   : > { %p3461_p3 = pnand %p3459_p1, %p3805_p8 }
  0x73   : > { %p3462_p11 = pneg %p3461_p3 }
  0x75   : > { %p3467_p13 = pnand %p3465_p12, %p3462_p11 }
  0x77   : > { %3470 = shalt.err (!%p3467_p13)
}
  0x78   : > { %s3471_s20 = scalar_lea.vmem %s387_s29, 1024  ;;  %p3479_p7 = scmp.lt.s32.totalorder %s387_s29, %s387_s29 }
  0x79   : > { %p3472_p0 = scmp.ne.s32.totalorder %s387_s29, %s3471_s20  ;;  %p3480_p9 = scmp.lt.s32.totalorder %s3471_s20, %s3471_s20 }
  0x7b   : > { %p3474_p2 = pnand %p3472_p0, %p3805_p8  ;;  %p3481_p4 = por %p3480_p9, %p3479_p7 }
  0x7d   : > { %p3475_p5 = pneg %p3474_p2 }
  0x7f   : > { %p3482_p10 = pnand %p3481_p4, %p3475_p5 }
  0x81   : > { %3485 = shalt.err (!%p3482_p10)
}
  0x82   : > { %s4365_s13 = smov 4   ;;  %s4366_s10 = smov 64  }
  0x83   : > { %3130 = dma.hbm_to_vmem [thread:$0]  (!%p3789_p6), %s4364_s4, 1024, %s387_s29, [#allocation9], %s4366_s10, %s4366_s10, %s4365_s13  }
  0x84   : > { %s3486_s12 = scalar_lea.hbm %s4337_s11, 4096 }
  0x85   : > { %p3487_p1 = scmp.ne.s32.totalorder %s4337_s11, %s3486_s12  ;;  %p3493_p12 = scmp.lt.u32.totalorder %s3486_s12, %s4337_s11 }
  0x87   : > { %p3489_p3 = pnand %p3487_p1, %p3805_p8 }
  0x89   : > { %p3490_p11 = pneg %p3489_p3 }
  0x8b   : > { %p3495_p13 = pnand %p3493_p12, %p3490_p11 }
  0x8d   : > { %3498 = shalt.err (!%p3495_p13)
}
  0x8e   : > { %s3499_s30 = scalar_lea.vmem %s428_s21, 4096  ;;  %p3507_p7 = scmp.lt.s32.totalorder %s428_s21, %s428_s21 }
  0x8f   : > { %p3500_p0 = scmp.ne.s32.totalorder %s428_s21, %s3499_s30  ;;  %p3508_p9 = scmp.lt.s32.totalorder %s3499_s30, %s3499_s30 }
  0x91   : > { %p3502_p2 = pnand %p3500_p0, %p3805_p8  ;;  %p3509_p4 = por %p3508_p9, %p3507_p7 }
  0x93   : > { %p3503_p5 = pneg %p3502_p2 }
  0x95   : > { %p3510_p10 = pnand %p3509_p4, %p3503_p5 }
  0x97   : > { %3513 = shalt.err (!%p3510_p10)
}
  0x98   : > { %3136 = dma.hbm_to_vmem [thread:$0]  (!%p3789_p6), %s4337_s11, 4096, %s428_s21, [#allocation12], %s4366_s10, %s4366_s10, %s4365_s13  }
  0x99   : > { %s2721_s18 = sadd.s32 4294967294, %s3656_s28   ;;  %s3918_s16 = sadd.s32 1, %s3656_s28  }
  0x9a   : > { %s41_s20 = sadd.s32 1, %s3652_s27  ;;  %s38_s2 = ssub.s32 %s3656_s28, %s3918_s16 }
  0x9b   : > { %p48_p8 = scmp.ne.s32.totalorder %s3652_s27, %s3648_s26  ;;  %p39_p1 = scmp.eq.s32.totalorder %s38_s2, 0 }
  0x9c   : > { %p49_p3 = scmp.eq.s32.totalorder %s3656_s28, 0  ;;  %p54_p11 = scmp.ne.s32.totalorder %s3648_s26, %s3644_s25 }
  0x9d   : > { %p335_p12 = scmp.eq.s32.totalorder %s3773_s14, 1  ;;  %p4367_p0 = scmp.eq.s32.totalorder %s3773_s14, 0 }
  0x9e   : > { %s3930_s3 = scalar_select %p39_p1, %s3652_s27, %s41_s20  }
  0x9f   : > { %p50_p13 = por %p49_p3, %p48_p8  ;;  %p3934_p2 = por %p4367_p0, %p54_p11 }
  0xa0   : > { %p3938_p6 = por %p335_p12, %p48_p8  ;;  %p341_p5 = scmp.eq.s32.totalorder %s2721_s18, 1 }
  0xa1   : > { %p3153_p7 = scmp.lt.s32.totalorder %s3656_s28, 2  ;;  %s3944_s13 = sand.u32 1, %s3652_s27  }
  0xa2   : > { %s4369_s21 = scalar_select %p3938_p6, 1, 0 }
  0xa3   : > { %p3946_p9 = por %p341_p5, %p54_p11  ;;  %s2729_s17 = sshll.u32 %s3944_s13, 3 }
  0xa4   : > { %s2730_s12 = sshll.u32 %s3656_s28, 7  ;;  %s4371_s0 = sld [smem:[#allocation21_spill]] }
  0xa5   : > { %s4370_s10 = scalar_select %p3946_p9, 1, 0 }
  0xa6   : > { %s448_s19 = scalar_lea.vmem [#allocation2], %s2729_s17  ;;  %p3957_p4 = pnand %p3153_p7, %p50_p13 }
  0xa7   : > { %s455_s30 = sshll.u32 %s448_s19, 4  ;;  %s2731_s8 = sshll.u32 %s3944_s13, 4  ;;  %s3961_s30 = int_to_ptr.vmem [resolvable:$true] %s455_s30 }
  0xa8   : > { %s445_s18 = scalar_lea.sflag [#allocation3], %s3944_s13  ;;  %p3516_p8 = pneg %p3957_p4 }
  0xaa   : > { %s3955_s24 = scalar_lea.hbm %s4371_s0, %s2730_s12  ;;  %s3519_s12 = scalar_lea.hbm %s4371_s0, 256 }
  0xab   : > { %s3514_s20 = scalar_lea.hbm %s3955_s24, 128  ;;  %p3520_p11 = scmp.lt.u32.totalorder %s3955_s24, %s4371_s0 }
  0xac   : > { %p3515_p10 = scmp.ne.s32.totalorder %s3955_s24, %s3514_s20  ;;  %p3521_p12 = scmp.lt.u32.totalorder %s3519_s12, %s3514_s20 }
  0xad   : > { %p3523_p0 = scmp.lt.u32.totalorder %s3514_s20, %s3955_s24 }
  0xae   : > { %p3517_p1 = pnand %p3516_p8, %p3515_p10  ;;  %p3522_p13 = por %p3521_p12, %p3520_p11 }
  0xb0   : > { %p3518_p3 = pneg %p3517_p1  ;;  %p3524_p5 = por %p3523_p0, %p3522_p13 }
  0xb2   : > { %p3525_p7 = pnand %p3524_p5, %p3518_p3 }
  0xb4   : > { %3528 = shalt.err (!%p3525_p7)
}
  0xb5   : > { %s3529_s19 = scalar_lea.vmem %s3961_s30, 128  ;;  %s3669_s2 = smov [#allocation2]  }
  0xb6   : > { %p3530_p10 = scmp.ne.s32.totalorder %s3961_s30, %s3529_s19  ;;  %s3534_s17 = sshll.u32 %s3669_s2, 4  ;;  %s3535_s17 = int_to_ptr.vmem [resolvable:$false] %s3534_s17 }
  0xb7   : > { %s3536_s22 = scalar_lea.vmem %s3535_s17, 256  ;;  %p3537_p6 = scmp.lt.s32.totalorder %s3961_s30, %s3535_s17 }
  0xb8   : > { %p3532_p1 = pnand %p3530_p10, %p3516_p8  ;;  %p3538_p11 = scmp.lt.s32.totalorder %s3536_s22, %s3529_s19 }
  0xba   : > { %p3533_p9 = pneg %p3532_p1  ;;  %p3539_p12 = por %p3538_p11, %p3537_p6 }
  0xbc   : > { %p3540_p13 = pnand %p3539_p12, %p3533_p9 }
  0xbe   : > { %3543 = shalt.err (!%p3540_p13)
}
  0xbf   : > { %3140 = dma.hbm_to_vmem [thread:$0]  (!%p3957_p4), %s3955_s24, 128, %s3961_s30, %s445_s18  }
  0xc0   : > { %s466_s20 = scalar_lea.vmem [#allocation5], %s2731_s8  ;;  %s462_s23 = sand.u32 1, %s3656_s28  }
  0xc1   : > { %s473_s12 = sshll.u32 %s466_s20, 4  ;;  %s2864_s2 = sshll.u32 %s3656_s28, 8  ;;  %s3993_s12 = int_to_ptr.vmem [resolvable:$true] %s473_s12 }
  0xc2   : > { %s3999_s22 = scalar_lea.hbm %s4327_s1, %s2864_s2  ;;  %s4001_s0 = scalar_lea.sflag [#allocation6], %s462_s23 }
  0xc3   : > { %s3544_s4 = scalar_lea.hbm %s3999_s22, 256  ;;  %s3549_s30 = scalar_lea.hbm %s4327_s1, 512 }
  0xc4   : > { %p3545_p6 = scmp.ne.s32.totalorder %s3999_s22, %s3544_s4  ;;  %p3550_p0 = scmp.lt.u32.totalorder %s3999_s22, %s4327_s1 }
  0xc5   : > { %p3551_p5 = scmp.lt.u32.totalorder %s3549_s30, %s3544_s4  ;;  %p3553_p10 = scmp.lt.u32.totalorder %s3544_s4, %s3999_s22 }
  0xc6   : > { %p3547_p9 = pnand %p3545_p6, %p3516_p8 }
  0xc7   : > { %p3552_p7 = por %p3551_p5, %p3550_p0 }
  0xc8   : > { %p3548_p3 = pneg %p3547_p9 }
  0xc9   : > { %p3554_p1 = por %p3553_p10, %p3552_p7 }
  0xcb   : > { %p3555_p11 = pnand %p3554_p1, %p3548_p3 }
  0xcd   : > { %3558 = shalt.err (!%p3555_p11)
}
  0xce   : > { %s3559_s20 = scalar_lea.vmem %s3993_s12, 256  ;;  %s3670_s23 = smov [#allocation5]  }
  0xcf   : > { %p3560_p12 = scmp.ne.s32.totalorder %s3993_s12, %s3559_s20  ;;  %s3564_s2 = sshll.u32 %s3670_s23, 4  ;;  %s3565_s2 = int_to_ptr.vmem [resolvable:$false] %s3564_s2 }
  0xd0   : > { %s3566_s19 = scalar_lea.vmem %s3565_s2, 512  ;;  %p3567_p9 = scmp.lt.s32.totalorder %s3993_s12, %s3565_s2 }
  0xd1   : > { %p3562_p13 = pnand %p3560_p12, %p3516_p8  ;;  %p3568_p0 = scmp.lt.s32.totalorder %s3566_s19, %s3559_s20 }
  0xd3   : > { %p3563_p6 = pneg %p3562_p13  ;;  %p3569_p5 = por %p3568_p0, %p3567_p9 }
  0xd5   : > { %p3570_p7 = pnand %p3569_p5, %p3563_p6 }
  0xd7   : > { %3573 = shalt.err (!%p3570_p7)
}
  0xd8   : > { %s4373_s4 = smov 8   ;;  %s4374_s17 = smov 128  }
  0xd9   : > { %3143 = dma.hbm_to_vmem [thread:$0]  (!%p3957_p4), %s3999_s22, 256, %s3993_s12, %s4001_s0, %s4374_s17, %s4374_s17, %s4373_s4  }
  0xda   : > { %p4375_p8 = scmp.ne.s32.totalorder %s4359_s15, 0 }
  0xdb   : > { %s4033_s13 = sand.u32 (!%p4375_p8), 1, %s3648_s26  }
  0xdc   : > { %485 = sbr.rel (%p4375_p8) target bundleno = 3245 (0xcad), region = 72  ;;  %s2735_s24 = sshll.u32 (!%p4375_p8), %s4033_s13, 3 }
  0xdd   : > { %s488_s30 = scalar_lea.sflag (!%p4375_p8), [#allocation3], %s4033_s13  ;;  %s4039_s29 = scalar_lea.vmem (!%p4375_p8), [#allocation2], %s2735_s24 }
  0xe3   : > { %3619 = dma.done.wait (%p3934_p2), %s488_s30, 128  }
  0xe4   : > { %3621 = vsyncadd (%p3934_p2), %s488_s30, 4294967168  ;;  %s496_s0 = sand.u32 1, %s3773_s14   ;;  %s2736_s15 = sshll.u32 %s4033_s13, 4 }
  0xe5   : > { %s497_s12 = scalar_lea.sflag [#allocation6], %s496_s0  ;;  %s500_s22 = scalar_lea.vmem [#allocation5], %s2736_s15 }
  0xe6   : > { %3623 = dma.done.wait (%p3934_p2), %s497_s12, 256  }
  0xe7   : > { %3625 = vsyncadd (%p3934_p2), %s497_s12, 4294967040  ;;  %p4376_p4 = scmp.eq.s32.totalorder %s3773_s14, 0 }
  0xe9   : > { %3627 = dma.done.wait (%p4376_p4), [#allocation6], 1024   ;;  %p4377_p3 = pmov %p4376_p4 }
  0xeb   : > { %3629 = vsyncadd (%p4377_p3), [#allocation6], 4294966272  ;;  %p4378_p10 = pmov %p4377_p3 }
  0xec   : > { %p4379_p1 = pmov %p4377_p3 }
  0xed   : > { %3631 = dma.done.wait (%p4378_p10), [#allocation9], 3072  }
  0xee   : > { %3633 = vsyncadd (%p4379_p1), [#allocation9], 4294964224  ;;  %p4380_p11 = pmov %p4379_p1 }
  0xef   : > { %p4381_p12 = pmov %p4379_p1 }
  0xf0   : > { %3635 = dma.done.wait (%p4380_p11), [#allocation12], 8192  }
  0xf1   : > { %3637 = vsyncadd (%p4381_p12), [#allocation12], 4294959104  ;;  %v571_v0 = vld [vmem:[%s500_s22] sm:$0xff]  ;;  %v572_v1 = vld [vmem:[%s500_s22 + $0x8] sm:$0xff]  ;;  %v3671_v6 = vmov 0.0   ;;  %vm3672_vm0 = vmmov 0  }
  0xf2   : > { %v570_v2 = vld [vmem:[%s4039_s29] sm:$0xff]  ;;  %601 = vadd.xlane.f32.xlu0 %v571_v0  ;;  %v3213_v3 = vld [vmem:[#allocation8 + $0x4] ss:$8 sps:$4 sm:$0xff]   ;;  %v3216_v5 = vld [vmem:[#allocation8] ss:$8 sps:$4 sm:$0xff]   ;;  %2959 = vmatprep.subr.bf16.mxu0 %v3671_v6  ;;  %v3673_v32 = vmov 0  }
  0xf3   : > { %575 = vadd.xlane.f32.xlu1 %v570_v2  ;;  %v3215_v4 = vld [vmem:[#allocation7] sm:$0xff]   ;;  %v3217_v7 = vld [vmem:[#allocation8 + $0x14] ss:$8 sps:$4 sm:$0xff]   ;;  %830 = vmatprep.subr.bf16.mxu1 %v3213_v3  ;;  %v3219_v20 = vld [vmem:[#allocation7 + $0x8] sm:$0xff]   ;;  %vm875_vm1 = vcmask 130048   ;;  %s3674_s23 = smov 112  }
  0xf4   : > { %2960 = vmatpush3.bf16.msra.mxu0 %v3215_v4  ;;  %831 = vmatpush1.bf16.msra.mxu1 %v3216_v5  ;;  %v3220_v21 = vld [vmem:[#allocation8 + $0x10] ss:$8 sps:$4 sm:$0xff]   ;;  %v3221_v22 = vld [vmem:[#allocation8 + $0x24] ss:$8 sps:$4 sm:$0xff]   ;;  %v3224_v24 = vld [vmem:[#allocation8 + $0x20] ss:$8 sps:$4 sm:$0xff]  }
  0xf5   : > { %2961 = vmatprep.subr.bf16.mxu0 %v3671_v6  ;;  %832 = vmatprep.subr.bf16.mxu1 %v3217_v7  ;;  %v3223_v23 = vld [vmem:[#allocation7 + $0x10] sm:$0xff]   ;;  %v3227_v26 = vld [vmem:[#allocation7 + $0x18] sm:$0xff]   ;;  %v3229_v28 = vld [vmem:[#allocation8 + $0x44] ss:$8 sps:$4 sm:$0xff]   ;;  %s3675_s2 = smov 80   ;;  %s3676_s19 = smov 64  }
  0xf6   : > { %603 = vadd.xlane.f32.xlu0 %v572_v1  ;;  %v3225_v25 = vld [vmem:[#allocation8 + $0x34] ss:$8 sps:$4 sm:$0xff]   ;;  %v3228_v27 = vld [vmem:[#allocation8 + $0x30] ss:$8 sps:$4 sm:$0xff]   ;;  %v3231_v29 = vld [vmem:[#allocation7 + $0x20] sm:$0xff]   ;;  %2975 = vmatprep.mubr.msk.bf16.mxu0 %vm3672_vm0, %v3671_v6  ;;  %s3677_s4 = smov 48  }
  0xf7   : > { %v3232_v30 = vld [vmem:[#allocation8 + $0x40] ss:$8 sps:$4 sm:$0xff]   ;;  %v3233_v31 = vld [vmem:[#allocation8 + $0x54] ss:$8 sps:$4 sm:$0xff]   ;;  %862 = vmatprep.mubr.bf16.mxu1 %v3673_v32  ;;  %v3236_v34 = vld [vmem:[#allocation8 + $0x50] ss:$8 sps:$4 sm:$0xff]  }
  0xf8   : > { %2962 = vmatpush3.bf16.msra.mxu0 %v3219_v20  ;;  %833 = vmatpush1.bf16.msra.mxu1 %v3220_v21  ;;  %v3235_v33 = vld [vmem:[#allocation7 + $0x28] sm:$0xff]   ;;  %v3239_v36 = vld [vmem:[#allocation7 + $0x30] sm:$0xff]   ;;  %v3243_v39 = vld [vmem:[#allocation7 + $0x38] sm:$0xff]   ;;  %s3678_s17 = smov 32   ;;  %s3679_s30 = smov 16   ;;  %vm1773_vm2 = vcmask 261120  }
  0xf9   : > { %2963 = vmatprep.subr.bf16.mxu0 %v3671_v6  ;;  %834 = vmatprep.subr.bf16.mxu1 %v3221_v22  ;;  %v3237_v35 = vld [vmem:[#allocation8 + $0x64] ss:$8 sps:$4 sm:$0xff]   ;;  %v3240_v37 = vld [vmem:[#allocation8 + $0x60] ss:$8 sps:$4 sm:$0xff]   ;;  %v3241_v38 = vld [vmem:[#allocation8 + $0x74] ss:$8 sps:$4 sm:$0xff]  }
  0xfa   : > { %v3244_v40 = vld [vmem:[#allocation8 + $0x70] ss:$8 sps:$4 sm:$0xff]   ;;  %s3680_s0 = smov 96   ;;  %vm1775_vm3 = vcmask 392192   ;;  %vm1777_vm4 = vcmask 523264   ;;  %vm1779_vm5 = vcmask 654336  }
  0xfb   : > { %v2743_v52 = vld [vmem:[%s4331_s5] ss:$0 sm:$0xff]  ;;  %vm1781_vm6 = vcmask 785408   ;;  %vm1783_vm7 = vcmask 916480   ;;  %s4382_s12 = sld [smem:[#allocation25_spill]]  ;;  %s4383_s8 = sld [smem:[#allocation26_spill]] }
  0xfc   : > { %2964 = vmatpush3.bf16.msra.mxu0 %v3223_v23  ;;  %835 = vmatpush1.bf16.msra.mxu1 %v3224_v24  ;;  %v2744_v57 = vld [vmem:[%s4332_s6] ss:$0 sm:$0xff]  ;;  %s2568_s7 = scalar_lea.sflag [#allocation4], %s4033_s13  ;;  %p4387_p13 = scmp.ne.s32.totalorder %s4369_s21, 0 }
  0xfd   : > { %2965 = vmatprep.subr.bf16.mxu0 %v3671_v6  ;;  %836 = vmatprep.subr.bf16.mxu1 %v3225_v25 }
 0x100   : > { %2966 = vmatpush3.bf16.msra.mxu0 %v3227_v26  ;;  %837 = vmatpush1.bf16.msra.mxu1 %v3228_v27 }
 0x101   : > { %2967 = vmatprep.subr.bf16.mxu0 %v3671_v6  ;;  %838 = vmatprep.subr.bf16.mxu1 %v3229_v28 }
 0x104   : > { %2968 = vmatpush3.bf16.msra.mxu0 %v3231_v29  ;;  %839 = vmatpush1.bf16.msra.mxu1 %v3232_v30 }
 0x105   : > { %2969 = vmatprep.subr.bf16.mxu0 %v3671_v6  ;;  %840 = vmatprep.subr.bf16.mxu1 %v3233_v31 }
 0x108   : > { %2970 = vmatpush3.bf16.msra.mxu0 %v3235_v33  ;;  %841 = vmatpush1.bf16.msra.mxu1 %v3236_v34 }
 0x109   : > { %2971 = vmatprep.subr.bf16.mxu0 %v3671_v6  ;;  %842 = vmatprep.subr.bf16.mxu1 %v3237_v35 }
 0x10c   : > { %2972 = vmatpush3.bf16.msra.mxu0 %v3239_v36  ;;  %843 = vmatpush1.bf16.msra.mxu1 %v3240_v37 }
 0x10d   : > { %2973 = vmatprep.subr.bf16.mxu0 %v3671_v6  ;;  %844 = vmatprep.subr.bf16.mxu1 %v3241_v38 }
 0x110   : > { %2974 = vmatpush3.bf16.msra.mxu0 %v3243_v39  ;;  %845 = vmatpush1.bf16.msra.mxu1 %v3244_v40 }
 0x111   : > { %2979 = vmatprep.subr.bf16.mxu1 %v3671_v6  ;;  %3003 = vmatprep.subr.bf16.mxu0 %v3671_v6 }
 0x17f   : > { %v602_v8 = vpop.xlane.xlu0 %601 }
 0x180   : > { %v576_v9 = vpop.xlane.xlu1 %575  ;;  %v605_v10 = vmul.f32 0.0078125, %v602_v8 }
 0x181   : > { %v578_v11 = vmul.f32 0.0078125, %v576_v9 }
 0x182   : > { %v4066_v12 = vsub.f32 %v571_v0, %v605_v10 }
 0x183   : > { %v4068_v13 = vsub.f32 %v570_v2, %v578_v11  ;;  %v604_v14 = vpop.xlane.xlu0 %603 }
 0x184   : > { %v606_v15 = vmul.f32 0.0078125, %v604_v14  ;;  %v609_v16 = vmul.f32 %v4066_v12, %v4066_v12 }
 0x185   : > { %v580_v18 = vmul.f32 %v4068_v13, %v4068_v13 }
 0x186   : > { %v4072_v17 = vsub.f32 %v572_v1, %v606_v15  ;;  %611 = vadd.xlane.f32.xlu1 %v609_v16 }
 0x188   : > { %v610_v19 = vmul.f32 %v4072_v17, %v4072_v17 }
 0x18a   : > { %613 = vadd.xlane.f32.xlu0 %v610_v19  ;;  %581 = vadd.xlane.f32.xlu1 %v580_v18 }
 0x213   : > { %v612_v41 = vpop.xlane.xlu1 %611 }
 0x214   : > { %v615_v42 = vmul.f32 0.0078125, %v612_v41 }
 0x216   : > { %v617_v43 = vadd.f32 1e-05, %v615_v42 }
 0x217   : > { %v614_v44 = vpop.xlane.xlu0 %613  ;;  %v582_v45 = vpop.xlane.xlu1 %581 }
 0x218   : > { %3333 = vrsqrt.f32 %v617_v43  ;;  %v616_v46 = vmul.f32 0.0078125, %v614_v44  ;;  %v583_v47 = vmul.f32 0.0078125, %v582_v45 }
 0x21a   : > { %v618_v48 = vadd.f32 1e-05, %v616_v46  ;;  %v584_v49 = vadd.f32 1e-05, %v583_v47 }
 0x21c   : > { %3335 = vrsqrt.f32 %v618_v48 }
 0x21d   : > { %3337 = vrsqrt.f32 %v584_v49 }
 0x222   : > { %v3334_v50 = vpop.eup %3333 }
 0x223   : > { %v621_v51 = vmul.f32 %v3334_v50, %v4066_v12 }
 0x225   : > { %v623_v56 = vmul.f32 %v2743_v52, %v621_v51 }
 0x226   : > { %v3336_v53 = vpop.eup %3335 }
 0x227   : > { %v3338_v54 = vpop.eup %3337  ;;  %v622_v55 = vmul.f32 %v3336_v53, %v4072_v17  ;;  %v625_v61 = vadd.f32 %v2744_v57, %v623_v56 }
 0x228   : > { %v586_v58 = vmul.f32 %v3338_v54, %v4068_v13 }
 0x229   : > { %v624_v59 = vmul.f32 %v2743_v52, %v622_v55 }
 0x22a   : > { %v593_v60 = vmul.f32 %v2743_v52, %v586_v58 }
 0x22b   : > { %v626_v62 = vadd.f32 %v2744_v57, %v624_v59 }
 0x22c   : > { %v600_v63 = vadd.f32 %v2744_v57, %v593_v60 }
 0x22d   : > { %v733_v0 = vpack.c.bf16 %v626_v62, %v625_v61 }
 0x22e   : > { %v627_v1 = vpack.c.bf16 %v600_v63, %v600_v63 }
 0x22f   : > { %863 = vmatmul.mubr.bf16.vlgmr.msra.gmra.mrb[0].mxu1 %v733_v0 }
 0x230   : > { %2976 = vmatmul.mubr.bf16.vlgmr.msra.gmra.mrb[0].mxu0 %v627_v1  ;;  %2981 = vmatprep.mubr.msk.bf16.mxu1 %vm3672_vm0, %v3671_v6 }
 0x231   : > { %3005 = vmatprep.mubr.msk.bf16.mxu0 %vm3672_vm0, %v3671_v6 }
 0x302   : > { %v864_v2 = vpop.f32.mrb[0].mxu1 }
 0x303   : > { %v726_v3 = vpop.f32.mrb[0].mxu0  ;;  %v866_v4 = vpop.f32.mrb[1].mxu1 }
 0x304   : > { %v2977_v5 = vpop.f32.mrb[1].mxu0  ;;  %v868_v7 = vpop.f32.mrb[2].mxu1  ;;  %v732_v14 = vpack.c.bf16 %v726_v3, %v726_v3 }
 0x305   : > { %v729_v8 = vpop.f32.mrb[2].mxu0  ;;  %v873_v9 = vpack.c.bf16 %v868_v7, %v864_v2  ;;  %v870_v10 = vpop.f32.mrb[3].mxu1 }
 0x306   : > { %v2978_v11 = vpop.f32.mrb[3].mxu0  ;;  %v4102_v12 = vpack.c.bf16 %v870_v10, %v866_v4 }
 0x307   : > { %v880_v13 = vsel %vm875_vm1, %v873_v9, 0 }
 0x308   : > { %2980 = vmatpush3.bf16.xpose.msra.mxu1 %v880_v13 }
 0x309   : > { %2985 = vmatprep.subr.bf16.mxu1 %v3671_v6 }
 0x30f   : > { %2982 = vmatmul.mubr.msk.bf16.vlgmr.msra.gmra.mrb[4].mxu1 %vm875_vm1, %v732_v14 }
 0x310   : > { %2986 = vmatpush3.bf16.msra.mxu1 %v4102_v12  ;;  %2987 = vmatprep.mubr.msk.bf16.mxu1 %vm3672_vm0, %v3671_v6 }
 0x311   : > { %2991 = vmatprep.subr.bf16.mxu1 %v3671_v6 }
 0x3e2   : > { %v916_v15 = vpop.f32.mrb[4].mxu1 }
 0x3e3   : > { %v922_v16 = vmul.f32 0.25, %v916_v15  ;;  %v2983_v17 = vpop.f32.mrb[5].mxu1 }
 0x3e4   : > { %v919_v18 = vpop.f32.mrb[6].mxu1 }
 0x3e5   : > { %v2984_v19 = vpop.f32.mrb[7].mxu1  ;;  %v923_v20 = vsel %vm875_vm1, %v922_v16, -inf }
 0x3e6   : > { %924 = vmax.xlane.f32.xlu0 %v923_v20 }
 0x3fc   : > { %982 = vrot.lane.b32.xlu0 %v873_v9, %s3674_s23 }
 0x400   : > { %1201 = vrot.lane.b32.xlu0 %v873_v9, %s3675_s2 }
 0x404   : > { %1310 = vrot.lane.b32.xlu0 %v873_v9, %s3676_s19 }
 0x408   : > { %1419 = vrot.lane.b32.xlu0 %v873_v9, %s3677_s4 }
 0x40c   : > { %1528 = vrot.lane.b32.xlu0 %v873_v9, %s3678_s17 }
 0x410   : > { %1637 = vrot.lane.b32.xlu0 %v873_v9, %s3679_s30 }
 0x473   : > { %v925_v21 = vpop.xlane.xlu0 %924 }
 0x474   : > { %v926_v22 = vsub.f32 %v922_v16, %v925_v21 }
 0x476   : > { %v927_v23 = vmul.f32 1.442695, %v926_v22 }
 0x477   : > { %v983_v28 = vpop.permute.xlu0 %982 }
 0x478   : > { %3339 = vpow2.f32 %v927_v23  ;;  %v988_v36 = vsel %vm875_vm1, %v983_v28, 0 }
 0x47b   : > { %v1202_v34 = vpop.permute.xlu0 %1201 }
 0x47c   : > { %v1207_v38 = vsel %vm875_vm1, %v1202_v34, 0 }
 0x47f   : > { %v1311_v39 = vpop.permute.xlu0 %1310 }
 0x480   : > { %v1316_v41 = vsel %vm875_vm1, %v1311_v39, 0 }
 0x482   : > { %v3340_v24 = vpop.eup %3339 }
 0x483   : > { %v929_v25 = vsel %vm875_vm1, %v3340_v24, 0.0  ;;  %v1420_v42 = vpop.permute.xlu0 %1419 }
 0x484   : > { %930 = vadd.xlane.f32.xlu1 %v929_v25  ;;  %v1425_v44 = vsel %vm875_vm1, %v1420_v42, 0 }
 0x487   : > { %v1529_v45 = vpop.permute.xlu0 %1528 }
 0x488   : > { %v1534_v47 = vsel %vm875_vm1, %v1529_v45, 0 }
 0x48b   : > { %v1638_v48 = vpop.permute.xlu0 %1637 }
 0x48c   : > { %v1643_v50 = vsel %vm875_vm1, %v1638_v48, 0 }
 0x495   : > { %979 = vrot.lane.b32.xlu1 %v732_v14, %s3674_s23 }
 0x499   : > { %1092 = vrot.lane.b32.xlu1 %v873_v9, %s3680_s0 }
 0x49d   : > { %1090 = vrot.lane.b32.xlu1 %v732_v14, %s3680_s0 }
 0x4a1   : > { %1199 = vrot.lane.b32.xlu1 %v732_v14, %s3675_s2 }
 0x4a5   : > { %1308 = vrot.lane.b32.xlu1 %v732_v14, %s3676_s19 }
 0x4a9   : > { %1417 = vrot.lane.b32.xlu1 %v732_v14, %s3677_s4 }
 0x4ad   : > { %1526 = vrot.lane.b32.xlu1 %v732_v14, %s3678_s17 }
 0x4b1   : > { %1635 = vrot.lane.b32.xlu1 %v732_v14, %s3679_s30 }
 0x511   : > { %v931_v26 = vpop.xlane.xlu1 %930 }
 0x512   : > { %3341 = vrcp.f32 %v931_v26 }
 0x515   : > { %v980_v27 = vpop.permute.xlu1 %979 }
 0x519   : > { %v1093_v29 = vpop.permute.xlu1 %1092 }
 0x51a   : > { %v1098_v30 = vsel %vm875_vm1, %v1093_v29, 0 }
 0x51b   : > { %3004 = vmatpush3.bf16.xpose.msra.mxu0 %v1098_v30 }
 0x51c   : > { %v3342_v31 = vpop.eup %3341  ;;  %3015 = vmatprep.subr.bf16.mxu0 %v3671_v6 }
 0x51d   : > { %v933_v33 = vmul.f32 %v3342_v31, %v3340_v24  ;;  %v1091_v37 = vpop.permute.xlu1 %1090 }
 0x51f   : > { %v934_v35 = vpack.c.bf16 %v933_v33, %v933_v33 }
 0x521   : > { %2988 = vmatmul.mubr.msk.bf16.vlgmr.msra.gmra.mrb[8].mxu1 %vm875_vm1, %v934_v35  ;;  %v1200_v40 = vpop.permute.xlu1 %1199 }
 0x522   : > { %2992 = vmatpush3.bf16.xpose.msra.mxu1 %v988_v36  ;;  %3006 = vmatmul.mubr.msk.bf16.vlgmr.msra.gmra.mrb[4].mxu0 %vm875_vm1, %v1091_v37 }
 0x523   : > { %3016 = vmatpush3.bf16.xpose.msra.mxu0 %v1207_v38  ;;  %2993 = vmatprep.mubr.msk.bf16.mxu1 %vm3672_vm0, %v3671_v6 }
 0x524   : > { %3017 = vmatprep.mubr.msk.bf16.mxu0 %vm3672_vm0, %v3671_v6  ;;  %3027 = vmatprep.subr.bf16.mxu0 %v3671_v6 }
 0x525   : > { %2997 = vmatprep.subr.bf16.mxu1 %v3671_v6  ;;  %v1309_v43 = vpop.permute.xlu1 %1308 }
 0x529   : > { %2994 = vmatmul.mubr.msk.bf16.vlgmr.msra.gmra.mrb[12].mxu1 %vm875_vm1, %v980_v27  ;;  %v1418_v46 = vpop.permute.xlu1 %1417 }
 0x52a   : > { %3018 = vmatmul.mubr.msk.bf16.vlgmr.msra.gmra.mrb[8].mxu0 %vm875_vm1, %v1200_v40  ;;  %2999 = vmatprep.mubr.msk.bf16.mxu1 %vm3672_vm0, %v3671_v6 }
 0x52b   : > { %3028 = vmatpush3.bf16.xpose.msra.mxu0 %v1316_v41  ;;  %3029 = vmatprep.mubr.msk.bf16.mxu0 %vm3672_vm0, %v3671_v6 }
 0x52c   : > { %3039 = vmatprep.subr.bf16.mxu0 %v3671_v6 }
 0x52d   : > { %v1527_v49 = vpop.permute.xlu1 %1526 }
 0x531   : > { %v1636_v51 = vpop.permute.xlu1 %1635 }
 0x532   : > { %3030 = vmatmul.mubr.msk.bf16.vlgmr.msra.gmra.mrb[12].mxu0 %vm875_vm1, %v1309_v43 }
 0x533   : > { %3040 = vmatpush3.bf16.xpose.msra.mxu0 %v1425_v44  ;;  %3041 = vmatprep.mubr.msk.bf16.mxu0 %vm3672_vm0, %v3671_v6 }
 0x534   : > { %3051 = vmatprep.subr.bf16.mxu0 %v3671_v6 }
 0x53a   : > { %3042 = vmatmul.mubr.msk.bf16.vlgmr.msra.gmra.mrb[16].mxu0 %vm875_vm1, %v1418_v46 }
 0x53b   : > { %3052 = vmatpush3.bf16.xpose.msra.mxu0 %v1534_v47  ;;  %3053 = vmatprep.mubr.msk.bf16.mxu0 %vm3672_vm0, %v3671_v6 }
 0x53c   : > { %3063 = vmatprep.subr.bf16.mxu0 %v3671_v6 }
 0x542   : > { %3054 = vmatmul.mubr.msk.bf16.vlgmr.msra.gmra.mrb[20].mxu0 %vm875_vm1, %v1527_v49 }
 0x543   : > { %3064 = vmatpush3.bf16.xpose.msra.mxu0 %v1643_v50  ;;  %3065 = vmatprep.mubr.msk.bf16.mxu0 %vm3672_vm0, %v3671_v6 }
 0x544   : > { %3075 = vmatprep.subr.bf16.mxu0 %v3671_v6 }
 0x54a   : > { %3066 = vmatmul.mubr.msk.bf16.vlgmr.msra.gmra.mrb[24].mxu0 %vm875_vm1, %v1636_v51 }
 0x54b   : > { %3091 = vmatprep.mubr.msk.bf16.mxu0 %vm3672_vm0, %v3671_v6 }
 0x5f4   : > { %v4165_v52 = vpop.f32.mrb[8].mxu1 }
 0x5f5   : > { %v2989_v53 = vpop.f32.mrb[9].mxu1  ;;  %v1134_v54 = vpop.f32.mrb[4].mxu0 }
 0x5f6   : > { %v1140_v55 = vmul.f32 0.25, %v1134_v54  ;;  %v975_v56 = vpop.f32.mrb[10].mxu1  ;;  %v3007_v57 = vpop.f32.mrb[5].mxu0 }
 0x5f7   : > { %v2990_v58 = vpop.f32.mrb[11].mxu1  ;;  %v1137_v59 = vpop.f32.mrb[6].mxu0 }
 0x5f8   : > { %v3008_v60 = vpop.f32.mrb[7].mxu0  ;;  %v1141_v61 = vsel %vm875_vm1, %v1140_v55, -inf }
 0x5f9   : > { %1142 = vmax.xlane.f32.xlu1 %v1141_v61 }
 0x5fc   : > { %v1024_v62 = vpop.f32.mrb[12].mxu1 }
 0x5fd   : > { %v1030_v63 = vmul.f32 0.25, %v1024_v62  ;;  %v2995_v0 = vpop.f32.mrb[13].mxu1  ;;  %v1243_v1 = vpop.f32.mrb[8].mxu0 }
 0x5fe   : > { %v1027_v2 = vpop.f32.mrb[14].mxu1  ;;  %v3019_v3 = vpop.f32.mrb[9].mxu0  ;;  %v1249_v4 = vmul.f32 0.25, %v1243_v1 }
 0x5ff   : > { %v2996_v5 = vpop.f32.mrb[15].mxu1  ;;  %v1246_v7 = vpop.f32.mrb[10].mxu0  ;;  %v1031_v8 = vsel %vm875_vm1, %v1030_v63, -inf }
 0x600   : > { %1032 = vmax.xlane.f32.xlu0 %v1031_v8  ;;  %v3020_v9 = vpop.f32.mrb[11].mxu0  ;;  %v1250_v10 = vsel %vm875_vm1, %v1249_v4, -inf }
 0x604   : > { %1251 = vmax.xlane.f32.xlu0 %v1250_v10 }
 0x605   : > { %v1352_v11 = vpop.f32.mrb[12].mxu0 }
 0x606   : > { %v1358_v13 = vmul.f32 0.25, %v1352_v11  ;;  %v3031_v14 = vpop.f32.mrb[13].mxu0 }
 0x607   : > { %v1355_v15 = vpop.f32.mrb[14].mxu0 }
 0x608   : > { %v3032_v16 = vpop.f32.mrb[15].mxu0  ;;  %v1359_v17 = vsel %vm875_vm1, %v1358_v13, -inf }
 0x609   : > { %1360 = vmax.xlane.f32.xlu0 %v1359_v17 }
 0x60d   : > { %v1461_v18 = vpop.f32.mrb[16].mxu0 }
 0x60e   : > { %v1467_v19 = vmul.f32 0.25, %v1461_v18  ;;  %v3043_v20 = vpop.f32.mrb[17].mxu0 }
 0x60f   : > { %v1464_v21 = vpop.f32.mrb[18].mxu0 }
 0x610   : > { %v3044_v22 = vpop.f32.mrb[19].mxu0  ;;  %v1468_v23 = vsel %vm875_vm1, %v1467_v19, -inf }
 0x611   : > { %1469 = vmax.xlane.f32.xlu0 %v1468_v23 }
 0x615   : > { %v1570_v24 = vpop.f32.mrb[20].mxu0 }
 0x616   : > { %v1576_v25 = vmul.f32 0.25, %v1570_v24  ;;  %v3055_v26 = vpop.f32.mrb[21].mxu0 }
 0x617   : > { %v1573_v27 = vpop.f32.mrb[22].mxu0 }
 0x618   : > { %v3056_v28 = vpop.f32.mrb[23].mxu0  ;;  %v1577_v29 = vsel %vm875_vm1, %v1576_v25, -inf }
 0x619   : > { %1578 = vmax.xlane.f32.xlu1 %v1577_v29 }
 0x61d   : > { %v1679_v30 = vpop.f32.mrb[24].mxu0 }
 0x61e   : > { %v1685_v31 = vmul.f32 0.25, %v1679_v30  ;;  %v3067_v33 = vpop.f32.mrb[25].mxu0 }
 0x61f   : > { %v1682_v34 = vpop.f32.mrb[26].mxu0 }
 0x620   : > { %v3068_v35 = vpop.f32.mrb[27].mxu0  ;;  %v1686_v36 = vsel %vm875_vm1, %v1685_v31, -inf }
 0x621   : > { %1687 = vmax.xlane.f32.xlu0 %v1686_v36 }
 0x686   : > { %v1143_v37 = vpop.xlane.xlu1 %1142 }
 0x687   : > { %v1144_v38 = vsub.f32 %v1140_v55, %v1143_v37 }
 0x689   : > { %v1145_v39 = vmul.f32 1.442695, %v1144_v38 }
 0x68b   : > { %3343 = vpow2.f32 %v1145_v39 }
 0x68d   : > { %v1033_v40 = vpop.xlane.xlu0 %1032 }
 0x68e   : > { %v1034_v41 = vsub.f32 %v1030_v63, %v1033_v40 }
 0x690   : > { %v1035_v44 = vmul.f32 1.442695, %v1034_v41 }
 0x691   : > { %v1252_v42 = vpop.xlane.xlu0 %1251 }
 0x692   : > { %v1253_v43 = vsub.f32 %v1249_v4, %v1252_v42 }
 0x694   : > { %v1254_v45 = vmul.f32 1.442695, %v1253_v43 }
 0x695   : > { %v4174_v46 = vpop.eup %3343 }
 0x696   : > { %3345 = vpow2.f32 %v1254_v45  ;;  %v1361_v47 = vpop.xlane.xlu0 %1360  ;;  %v1147_v48 = vsel %vm875_vm1, %v4174_v46, 0.0 }
 0x697   : > { %v1362_v49 = vsub.f32 %v1358_v13, %v1361_v47  ;;  %1148 = vadd.xlane.f32.xlu0 %v1147_v48  ;;  %3347 = vpow2.f32 %v1035_v44 }
 0x699   : > { %v1363_v50 = vmul.f32 1.442695, %v1362_v49 }
 0x69b   : > { %3349 = vpow2.f32 %v1363_v50 }
 0x69e   : > { %v1470_v51 = vpop.xlane.xlu0 %1469 }
 0x69f   : > { %v1471_v53 = vsub.f32 %v1467_v19, %v1470_v51 }
 0x6a0   : > { %v3346_v54 = vpop.eup %3345 }
 0x6a1   : > { %v1472_v55 = vmul.f32 1.442695, %v1471_v53  ;;  %v1256_v56 = vsel %vm875_vm1, %v3346_v54, 0.0  ;;  %v3348_v57 = vpop.eup %3347 }
 0x6a2   : > { %1257 = vadd.xlane.f32.xlu1 %v1256_v56  ;;  %v1037_v59 = vsel %vm875_vm1, %v3348_v57, 0.0 }
 0x6a3   : > { %3351 = vpow2.f32 %v1472_v55 }
 0x6a5   : > { %v4179_v58 = vpop.eup %3349 }
 0x6a6   : > { %1038 = vadd.xlane.f32.xlu1 %v1037_v59  ;;  %v1365_v60 = vsel %vm875_vm1, %v4179_v58, 0.0  ;;  %v1579_v63 = vpop.xlane.xlu1 %1578  ;;  %v3245_v59 = vld [vmem:[#allocation10] sm:$0xff]  }
 0x6a7   : > { %1366 = vadd.xlane.f32.xlu0 %v1365_v60  ;;  %v1580_v0 = vsub.f32 %v1576_v25, %v1579_v63  ;;  %3076 = vmatpush3.bf16.msra.mxu0 %v3245_v59  ;;  %v3246_v60 = vld [vmem:[#allocation10 + $0x8] sm:$0xff]   ;;  %v3248_v63 = vld [vmem:[#allocation10 + $0x18] sm:$0xff]  }
 0x6a8   : > { %3077 = vmatprep.subr.bf16.mxu0 %v3671_v6  ;;  %v3274_v59 = vld [vmem:[#allocation11 + $0x68] ss:$16 sps:$4 sm:$0xff]  }
 0x6a9   : > { %v1581_v1 = vmul.f32 1.442695, %v1580_v0 }
 0x6ab   : > { %3353 = vpow2.f32 %v1581_v1  ;;  %3078 = vmatpush3.bf16.msra.mxu0 %v3246_v60  ;;  %v3279_v60 = vld [vmem:[#allocation11 + $0x84] ss:$16 sps:$4 sm:$0xff]  }
 0x6ac   : > { %3079 = vmatprep.subr.bf16.mxu0 %v3671_v6 }
 0x6ad   : > { %v4184_v61 = vpop.eup %3351 }
 0x6ae   : > { %v1474_v62 = vsel %vm875_vm1, %v4184_v61, 0.0  ;;  %v1688_v2 = vpop.xlane.xlu0 %1687 }
 0x6af   : > { %1475 = vadd.xlane.f32.xlu0 %v1474_v62  ;;  %v1689_v3 = vsub.f32 %v1685_v31, %v1688_v2  ;;  %v3249_v2 = vld [vmem:[#allocation10 + $0x20] sm:$0xff]  }
 0x6b1   : > { %v1690_v4 = vmul.f32 1.442695, %v1689_v3 }
 0x6b3   : > { %3355 = vpow2.f32 %v1690_v4  ;;  %v3250_v4 = vld [vmem:[#allocation10 + $0x28] sm:$0xff]  }
 0x6b5   : > { %v4194_v5 = vpop.eup %3353 }
 0x6b6   : > { %v1583_v7 = vsel %vm875_vm1, %v4194_v5, 0.0 }
 0x6b7   : > { %1044 = vrot.lane.b32.xlu1 %v4102_v12, %s3674_s23 }
 0x6bd   : > { %v4198_v8 = vpop.eup %3355 }
 0x6be   : > { %v1692_v9 = vsel %vm875_vm1, %v4198_v8, 0.0 }
 0x6c5   : > { %1153 = vrot.lane.b32.xlu0 %v4102_v12, %s3680_s0 }
 0x6c9   : > { %1262 = vrot.lane.b32.xlu0 %v4102_v12, %s3675_s2 }
 0x6db   : > { %1584 = vadd.xlane.f32.xlu1 %v1583_v7 }
 0x6e8   : > { %1693 = vadd.xlane.f32.xlu0 %v1692_v9 }
 0x6ec   : > { %1371 = vrot.lane.b32.xlu1 %v4102_v12, %s3676_s19 }
 0x6f0   : > { %1589 = vrot.lane.b32.xlu1 %v4102_v12, %s3678_s17 }
 0x6f4   : > { %1698 = vrot.lane.b32.xlu1 %v4102_v12, %s3679_s30 }
 0x6fe   : > { %1480 = vrot.lane.b32.xlu0 %v4102_v12, %s3677_s4 }
 0x724   : > { %v1149_v13 = vpop.xlane.xlu0 %1148 }
 0x72f   : > { %v1258_v10 = vpop.xlane.xlu1 %1257 }
 0x733   : > { %v1039_v11 = vpop.xlane.xlu1 %1038 }
 0x734   : > { %3357 = vrcp.f32 %v1039_v11  ;;  %v1367_v15 = vpop.xlane.xlu0 %1366  ;;  %v3252_v11 = vld [vmem:[#allocation10 + $0x38] sm:$0xff]  }
 0x735   : > { %3359 = vrcp.f32 %v1149_v13 }
 0x736   : > { %3361 = vrcp.f32 %v1258_v10 }
 0x737   : > { %v1045_v14 = vpop.permute.xlu1 %1044  ;;  %3363 = vrcp.f32 %v1367_v15 }
 0x738   : > { %2998 = vmatpush3.bf16.msra.mxu1 %v1045_v14 }
 0x739   : > { %3009 = vmatprep.subr.bf16.mxu1 %v3671_v6 }
 0x73c   : > { %v1476_v16 = vpop.xlane.xlu0 %1475 }
 0x73d   : > { %3365 = vrcp.f32 %v1476_v16 }
 0x73e   : > { %v3358_v17 = vpop.eup %3357 }
 0x73f   : > { %v1041_v18 = vmul.f32 %v3358_v17, %v3348_v57  ;;  %v3360_v20 = vpop.eup %3359 }
 0x740   : > { %v1154_v21 = vpop.permute.xlu0 %1153  ;;  %v1151_v12 = vmul.f32 %v3360_v20, %v4174_v46  ;;  %v3362_v23 = vpop.eup %3361 }
 0x741   : > { %v1042_v19 = vpack.c.bf16 %v1041_v18, %v1041_v18  ;;  %v1260_v25 = vmul.f32 %v3362_v23, %v3346_v54  ;;  %v3364_v27 = vpop.eup %3363 }
 0x742   : > { %v1152_v22 = vpack.c.bf16 %v1151_v12, %v1151_v12  ;;  %v1369_v29 = vmul.f32 %v3364_v27, %v4179_v58 }
 0x743   : > { %3000 = vmatmul.mubr.msk.bf16.vlgmr.msra.gmra.mrb[16].mxu1 %vm875_vm1, %v1042_v19  ;;  %v1261_v26 = vpack.c.bf16 %v1260_v25, %v1260_v25 }
 0x744   : > { %3010 = vmatpush3.bf16.msra.mxu1 %v1154_v21  ;;  %3011 = vmatprep.mubr.msk.bf16.mxu1 %vm3672_vm0, %v3671_v6  ;;  %v1263_v24 = vpop.permute.xlu0 %1262  ;;  %v1370_v31 = vpack.c.bf16 %v1369_v29, %v1369_v29 }
 0x745   : > { %3021 = vmatprep.subr.bf16.mxu1 %v3671_v6 }
 0x747   : > { %v3366_v33 = vpop.eup %3365 }
 0x748   : > { %v1478_v35 = vmul.f32 %v3366_v33, %v4184_v61  ;;  %v3247_v61 = vld [vmem:[#allocation10 + $0x10] sm:$0xff]  }
 0x749   : > { %3080 = vmatpush3.bf16.msra.mxu0 %v3247_v61  ;;  %v3282_v61 = vld [vmem:[#allocation11 + $0x8c] ss:$16 sps:$4 sm:$0xff]  }
 0x74a   : > { %v1479_v37 = vpack.c.bf16 %v1478_v35, %v1478_v35  ;;  %3081 = vmatprep.subr.bf16.mxu0 %v3671_v6 }
 0x74b   : > { %3012 = vmatmul.mubr.msk.bf16.vlgmr.msra.gmra.mrb[20].mxu1 %vm875_vm1, %v1152_v22 }
 0x74c   : > { %3022 = vmatpush3.bf16.msra.mxu1 %v1263_v24  ;;  %3023 = vmatprep.mubr.msk.bf16.mxu1 %vm3672_vm0, %v3671_v6 }
 0x74d   : > { %3033 = vmatprep.subr.bf16.mxu1 %v3671_v6  ;;  %3082 = vmatpush3.bf16.msra.mxu0 %v3248_v63  ;;  %v3280_v63 = vld [vmem:[#allocation11 + $0x88] ss:$16 sps:$4 sm:$0xff]  }
 0x74e   : > { %3083 = vmatprep.subr.bf16.mxu0 %v3671_v6 }
 0x751   : > { %3084 = vmatpush3.bf16.msra.mxu0 %v3249_v2  ;;  %v3283_v2 = vld [vmem:[#allocation11 + $0xa0] ss:$16 sps:$4 sm:$0xff]  }
 0x752   : > { %3085 = vmatprep.subr.bf16.mxu0 %v3671_v6 }
 0x753   : > { %3024 = vmatmul.mubr.msk.bf16.vlgmr.msra.gmra.mrb[24].mxu1 %vm875_vm1, %v1261_v26 }
 0x754   : > { %3035 = vmatprep.mubr.msk.bf16.mxu1 %vm3672_vm0, %v3671_v6 }
 0x755   : > { %3086 = vmatpush3.bf16.msra.mxu0 %v3250_v4  ;;  %v3291_v4 = vld [vmem:[#allocation11 + $0xc4] ss:$16 sps:$4 sm:$0xff]  }
 0x756   : > { %3087 = vmatprep.subr.bf16.mxu0 %v3671_v6 }
 0x768   : > { %v1585_v28 = vpop.xlane.xlu1 %1584 }
 0x769   : > { %3367 = vrcp.f32 %v1585_v28 }
 0x76c   : > { %v1372_v30 = vpop.permute.xlu1 %1371 }
 0x76d   : > { %3034 = vmatpush3.bf16.msra.mxu1 %v1372_v30 }
 0x76e   : > { %3045 = vmatprep.subr.bf16.mxu1 %v3671_v6 }
 0x770   : > { %3036 = vmatmul.mubr.msk.bf16.vlgmr.msra.gmra.mrb[28].mxu1 %vm875_vm1, %v1370_v31  ;;  %v1590_v39 = vpop.permute.xlu1 %1589 }
 0x771   : > { %3047 = vmatprep.mubr.msk.bf16.mxu1 %vm3672_vm0, %v3671_v6 }
 0x773   : > { %v3368_v38 = vpop.eup %3367 }
 0x774   : > { %v1587_v40 = vmul.f32 %v3368_v38, %v4194_v5  ;;  %v1699_v43 = vpop.permute.xlu1 %1698  ;;  %v3251_v5 = vld [vmem:[#allocation10 + $0x30] sm:$0xff]  }
 0x775   : > { %v1694_v34 = vpop.xlane.xlu0 %1693  ;;  %3088 = vmatpush3.bf16.msra.mxu0 %v3251_v5  ;;  %v3294_v5 = vld [vmem:[#allocation11 + $0xcc] ss:$16 sps:$4 sm:$0xff]  }
 0x776   : > { %3369 = vrcp.f32 %v1694_v34  ;;  %v1588_v41 = vpack.c.bf16 %v1587_v40, %v1587_v40  ;;  %3089 = vmatprep.subr.bf16.mxu0 %v3671_v6  ;;  %v3253_v40 = vld [vmem:[#allocation11] ss:$16 sps:$4 sm:$0xff]  }
 0x779   : > { %v1481_v36 = vpop.permute.xlu0 %1480  ;;  %3090 = vmatpush3.bf16.msra.mxu0 %v3252_v11  ;;  %v3295_v11 = vld [vmem:[#allocation11 + $0xe0] ss:$16 sps:$4 sm:$0xff]  }
 0x77a   : > { %3046 = vmatpush3.bf16.msra.mxu1 %v1481_v36 }
 0x77b   : > { %3057 = vmatprep.subr.bf16.mxu1 %v3671_v6 }
 0x77d   : > { %3048 = vmatmul.mubr.msk.bf16.vlgmr.msra.gmra.mrb[32].mxu1 %vm875_vm1, %v1479_v37 }
 0x77e   : > { %3058 = vmatpush3.bf16.msra.mxu1 %v1590_v39  ;;  %3059 = vmatprep.mubr.msk.bf16.mxu1 %vm3672_vm0, %v3671_v6 }
 0x77f   : > { %3069 = vmatprep.subr.bf16.mxu1 %v3671_v6 }
 0x780   : > { %v3370_v42 = vpop.eup %3369 }
 0x781   : > { %v1696_v44 = vmul.f32 %v3370_v42, %v4198_v8  ;;  %v3256_v42 = vld [vmem:[#allocation11 + $0x8] ss:$16 sps:$4 sm:$0xff]  }
 0x783   : > { %v1697_v45 = vpack.c.bf16 %v1696_v44, %v1696_v44  ;;  %v3261_v44 = vld [vmem:[#allocation11 + $0x24] ss:$16 sps:$4 sm:$0xff]  }
 0x785   : > { %3060 = vmatmul.mubr.msk.bf16.vlgmr.msra.gmra.mrb[36].mxu1 %vm875_vm1, %v1588_v41  ;;  %v3255_v41 = vld [vmem:[#allocation11 + $0x4] ss:$16 sps:$4 sm:$0xff]  }
 0x786   : > { %3070 = vmatpush3.bf16.msra.mxu1 %v1699_v43  ;;  %3071 = vmatprep.mubr.msk.bf16.mxu1 %vm3672_vm0, %v3671_v6  ;;  %v3258_v43 = vld [vmem:[#allocation11 + $0xc] ss:$16 sps:$4 sm:$0xff]  }
 0x787   : > { %2132 = vmatprep.subr.bf16.mxu1 %v3255_v41  ;;  %2173 = vmatprep.subr.bf16.mxu0 %v3258_v43  ;;  %v3319_v41 = vld [vmem:[#allocation13 + $0x20] sm:$0xff]   ;;  %v3321_v43 = vld [vmem:[#allocation13 + $0x68] sm:$0xff]  }
 0x78d   : > { %3072 = vmatmul.mubr.msk.bf16.vlgmr.msra.gmra.mrb[40].mxu1 %vm875_vm1, %v1697_v45  ;;  %v3264_v45 = vld [vmem:[#allocation11 + $0x2c] ss:$16 sps:$4 sm:$0xff]  }
 0x78e   : > { %2164 = vmatprep.mubr.bf16.mxu1 %v3673_v32  ;;  %2133 = vmatpush1.bf16.msra.mxu1 %v3253_v40  ;;  %v3318_v40 = vld [vmem:[#allocation13 + $0xe0] sm:$0xff]  }
 0x78f   : > { %2134 = vmatprep.subr.bf16.mxu1 %v3261_v44  ;;  %v3322_v44 = vld [vmem:[#allocation13 + $0xe8] sm:$0xff]  }
 0x816   : > { %v1084_v46 = vpop.f32.mrb[16].mxu1 }
 0x817   : > { %1745 = vrot.lane.b32.xlu1 %v1084_v46, %s3679_s30  ;;  %v3001_v47 = vpop.f32.mrb[17].mxu1  ;;  %v3259_v46 = vld [vmem:[#allocation11 + $0x20] ss:$16 sps:$4 sm:$0xff]   ;;  %s567_s30 = scalar_lea.vmem [#allocation14], %s2735_s24 }
 0x818   : > { %v1087_v48 = vpop.f32.mrb[18].mxu1  ;;  %v3267_v47 = vld [vmem:[#allocation11 + $0x44] ss:$16 sps:$4 sm:$0xff]   ;;  %2135 = vmatpush1.bf16.msra.mxu1 %v3259_v46  ;;  %v3324_v46 = vld [vmem:[#allocation13 + $0xa8] sm:$0xff]  }
 0x819   : > { %v3002_v49 = vpop.f32.mrb[19].mxu1  ;;  %v3270_v48 = vld [vmem:[#allocation11 + $0x4c] ss:$16 sps:$4 sm:$0xff]   ;;  %2136 = vmatprep.subr.bf16.mxu1 %v3267_v47  ;;  %v3326_v47 = vld [vmem:[#allocation13 + $0xf0] sm:$0xff]  }
 0x81a   : > { %v3265_v49 = vld [vmem:[#allocation11 + $0x40] ss:$16 sps:$4 sm:$0xff]  }
 0x81c   : > { %2137 = vmatpush1.bf16.msra.mxu1 %v3265_v49  ;;  %v3328_v49 = vld [vmem:[#allocation13 + $0xb0] sm:$0xff]  }
 0x81e   : > { %v1193_v50 = vpop.f32.mrb[20].mxu1 }
 0x81f   : > { %1749 = vrot.lane.b32.xlu1 %v1193_v50, %s3678_s17  ;;  %v3013_v51 = vpop.f32.mrb[21].mxu1  ;;  %v3268_v50 = vld [vmem:[#allocation11 + $0x48] ss:$16 sps:$4 sm:$0xff]   ;;  %s2861_s17 = sshll.u32 %s3773_s14, 7  ;;  %s3681_s14 = smov [#allocation14]  }
 0x820   : > { %v1196_v53 = vpop.f32.mrb[22].mxu1  ;;  %s3578_s24 = sshll.u32 %s3681_s14, 4  ;;  %s3579_s24 = int_to_ptr.vmem [resolvable:$false] %s3578_s24 }
 0x821   : > { %v3014_v54 = vpop.f32.mrb[23].mxu1  ;;  %s3580_s18 = scalar_lea.vmem %s3579_s24, 256 }
 0x826   : > { %v1302_v55 = vpop.f32.mrb[24].mxu1 }
 0x827   : > { %1753 = vrot.lane.b32.xlu1 %v1302_v55, %s3677_s4  ;;  %v3025_v56 = vpop.f32.mrb[25].mxu1  ;;  %s4385_s4 = sld [smem:[#allocation28_spill]] }
 0x828   : > { %v1305_v57 = vpop.f32.mrb[26].mxu1  ;;  %v3273_v56 = vld [vmem:[#allocation11 + $0x64] ss:$16 sps:$4 sm:$0xff]  }
 0x829   : > { %v3026_v58 = vpop.f32.mrb[27].mxu1  ;;  %v3276_v57 = vld [vmem:[#allocation11 + $0x6c] ss:$16 sps:$4 sm:$0xff]   ;;  %2138 = vmatprep.subr.bf16.mxu1 %v3273_v56 }
 0x82a   : > { %v3271_v58 = vld [vmem:[#allocation11 + $0x60] ss:$16 sps:$4 sm:$0xff]  }
 0x82b   : > { %2139 = vmatpush1.bf16.msra.mxu1 %v3271_v58 }
 0x82c   : > { %2140 = vmatprep.subr.bf16.mxu1 %v3279_v60 }
 0x843   : > { %v1411_v62 = vpop.f32.mrb[28].mxu1 }
 0x844   : > { %1757 = vrot.lane.b32.xlu0 %v1411_v62, %s3676_s19  ;;  %v3037_v0 = vpop.f32.mrb[29].mxu1  ;;  %v3277_v62 = vld [vmem:[#allocation11 + $0x80] ss:$16 sps:$4 sm:$0xff]  }
 0x845   : > { %v1414_v1 = vpop.f32.mrb[30].mxu1  ;;  %2141 = vmatpush1.bf16.msra.mxu1 %v3277_v62  ;;  %v3285_v0 = vld [vmem:[#allocation11 + $0xa4] ss:$16 sps:$4 sm:$0xff]  }
 0x846   : > { %v3038_v3 = vpop.f32.mrb[31].mxu1  ;;  %v3288_v1 = vld [vmem:[#allocation11 + $0xac] ss:$16 sps:$4 sm:$0xff]   ;;  %2142 = vmatprep.subr.bf16.mxu1 %v3285_v0 }
 0x847   : > { %v3286_v3 = vld [vmem:[#allocation11 + $0xa8] ss:$16 sps:$4 sm:$0xff]  }
 0x849   : > { %2143 = vmatpush1.bf16.msra.mxu1 %v3283_v2 }
 0x84a   : > { %2144 = vmatprep.subr.bf16.mxu1 %v3291_v4 }
 0x850   : > { %v1520_v7 = vpop.f32.mrb[32].mxu1 }
 0x851   : > { %1761 = vrot.lane.b32.xlu1 %v1520_v7, %s3675_s2  ;;  %v3049_v8 = vpop.f32.mrb[33].mxu1  ;;  %v3289_v7 = vld [vmem:[#allocation11 + $0xc0] ss:$16 sps:$4 sm:$0xff]  }
 0x852   : > { %v1523_v9 = vpop.f32.mrb[34].mxu1  ;;  %v3292_v8 = vld [vmem:[#allocation11 + $0xc8] ss:$16 sps:$4 sm:$0xff]   ;;  %2145 = vmatpush1.bf16.msra.mxu1 %v3289_v7 }
 0x853   : > { %v3050_v10 = vpop.f32.mrb[35].mxu1  ;;  %v3297_v9 = vld [vmem:[#allocation11 + $0xe4] ss:$16 sps:$4 sm:$0xff]  }
 0x854   : > { %v3300_v10 = vld [vmem:[#allocation11 + $0xec] ss:$16 sps:$4 sm:$0xff]   ;;  %2146 = vmatprep.subr.bf16.mxu1 %v3297_v9 }
 0x856   : > { %2147 = vmatpush1.bf16.msra.mxu1 %v3295_v11 }
 0x858   : > { %v1629_v13 = vpop.f32.mrb[36].mxu1 }
 0x859   : > { %1765 = vrot.lane.b32.xlu0 %v1629_v13, %s3680_s0  ;;  %v3061_v14 = vpop.f32.mrb[37].mxu1  ;;  %v3298_v13 = vld [vmem:[#allocation11 + $0xe8] ss:$16 sps:$4 sm:$0xff]   ;;  %s2581_s0 = sshll.u32 %s567_s30, 4  ;;  %s4284_s0 = int_to_ptr.vmem [resolvable:$true] %s2581_s0 }
 0x85a   : > { %v1632_v15 = vpop.f32.mrb[38].mxu1  ;;  %v3301_v14 = vld [vmem:[#allocation13 + $0x40] sm:$0xff]   ;;  %p3581_p0 = scmp.lt.s32.totalorder %s4284_s0, %s3579_s24 }
 0x85b   : > { %v3062_v16 = vpop.f32.mrb[39].mxu1  ;;  %v3302_v15 = vld [vmem:[#allocation13 + $0xc0] sm:$0xff]   ;;  %2915 = vmatprep.subr.bf16.mxu1 %v3301_v14 }
 0x860   : > { %v1738_v17 = vpop.f32.mrb[40].mxu1 }
 0x861   : > { %1769 = vrot.lane.b32.xlu1 %v1738_v17, %s3674_s23  ;;  %v3073_v18 = vpop.f32.mrb[41].mxu1  ;;  %s4384_s23 = sld [smem:[#allocation27_spill]] }
 0x862   : > { %v1741_v19 = vpop.f32.mrb[42].mxu1 }
 0x863   : > { %v3074_v20 = vpop.f32.mrb[43].mxu1 }
 0x864   : > { %v2793_v20 = vld [vmem:[%s4382_s12] ss:$0 sm:$0xff]  ;;  %s4386_s12 = sld [smem:[#allocation29_spill]] }
 0x86a   : > { %s4282_s22 = scalar_lea.hbm %s4386_s12, %s2861_s17 }
 0x889   : > { %v1746_v21 = vpop.permute.xlu1 %1745 }
 0x88a   : > { %v1772_v23 = vsel %vm875_vm1, %v4165_v52, %v1746_v21  ;;  %v3373_v52 = vld [vmem:[%s4039_s29] sm:$0xff] }
 0x891   : > { %v1750_v12 = vpop.permute.xlu1 %1749 }
 0x892   : > { %v1774_v24 = vsel %vm1773_vm2, %v1772_v23, %v1750_v12  ;;  %v2794_v12 = vld [vmem:[%s4383_s8] ss:$0 sm:$0xff]  ;;  %v3303_v23 = vld [vmem:[#allocation13] sm:$0xff]   ;;  %s3574_s8 = scalar_lea.vmem %s4284_s0, 128 }
 0x893   : > { %p3575_p2 = scmp.ne.s32.totalorder %s4284_s0, %s3574_s8  ;;  %p3582_p5 = scmp.lt.s32.totalorder %s3580_s18, %s3574_s8 }
 0x895   : > { %p3576_p6 = pnand %p3575_p2, %p4387_p13  ;;  %p3583_p7 = por %p3582_p5, %p3581_p0 }
 0x897   : > { %p3577_p9 = pneg %p3576_p6 }
 0x899   : > { %v1754_v22 = vpop.permute.xlu1 %1753  ;;  %p3584_p8 = pnand %p3583_p7, %p3577_p9 }
 0x89a   : > { %v1776_v26 = vsel %vm1775_vm3, %v1774_v24, %v1754_v22  ;;  %v3304_v24 = vld [vmem:[#allocation13 + $0x80] sm:$0xff]  }
 0x8b6   : > { %v1758_v6 = vpop.permute.xlu0 %1757 }
 0x8b7   : > { %v1778_v28 = vsel %vm1777_vm4, %v1776_v26, %v1758_v6  ;;  %v3305_v26 = vld [vmem:[#allocation13 + $0x48] sm:$0xff]  }
 0x8c3   : > { %v1762_v25 = vpop.permute.xlu1 %1761 }
 0x8c4   : > { %v1780_v29 = vsel %vm1779_vm5, %v1778_v28, %v1762_v25  ;;  %v3307_v28 = vld [vmem:[#allocation13 + $0x8] sm:$0xff]  }
 0x8cb   : > { %v1766_v27 = vpop.permute.xlu0 %1765 }
 0x8cc   : > { %v1782_v30 = vsel %vm1781_vm6, %v1780_v29, %v1766_v27  ;;  %v3306_v27 = vld [vmem:[#allocation13 + $0xc8] sm:$0xff]  }
 0x8cd   : > { %v3308_v29 = vld [vmem:[#allocation13 + $0x88] sm:$0xff]  }
 0x8d3   : > { %v1770_v31 = vpop.permute.xlu1 %1769 }
 0x8d4   : > { %v1784_v33 = vsel %vm1783_vm7, %v1782_v30, %v1770_v31  ;;  %v3309_v30 = vld [vmem:[#allocation13 + $0x50] sm:$0xff]  }
 0x8d5   : > { %v1785_v34 = vpack.c.bf16 %v1784_v33, %v1784_v33  ;;  %v3310_v31 = vld [vmem:[#allocation13 + $0xd0] sm:$0xff]  }
 0x8d6   : > { %v3311_v33 = vld [vmem:[#allocation13 + $0x10] sm:$0xff]  }
 0x8d7   : > { %3092 = vmatmul.mubr.bf16.vlgmr.msra.gmra.mrb[28].mxu0 %v1785_v34  ;;  %v3312_v34 = vld [vmem:[#allocation13 + $0x90] sm:$0xff]  }
 0x8d8   : > { %2205 = vmatprep.mubr.bf16.mxu0 %v3673_v32  ;;  %2174 = vmatpush1.bf16.msra.mxu0 %v3256_v42  ;;  %v3262_v32 = vld [vmem:[#allocation11 + $0x28] ss:$16 sps:$4 sm:$0xff]   ;;  %v3320_v42 = vld [vmem:[#allocation13 + $0xa0] sm:$0xff]  }
 0x8d9   : > { %2175 = vmatprep.subr.bf16.mxu0 %v3264_v45  ;;  %v3323_v45 = vld [vmem:[#allocation13 + $0x28] sm:$0xff]  }
 0x8dc   : > { %2176 = vmatpush1.bf16.msra.mxu0 %v3262_v32  ;;  %v3325_v32 = vld [vmem:[#allocation13 + $0x70] sm:$0xff]  }
 0x8dd   : > { %2177 = vmatprep.subr.bf16.mxu0 %v3270_v48  ;;  %v3327_v48 = vld [vmem:[#allocation13 + $0x30] sm:$0xff]  }
 0x8e0   : > { %2178 = vmatpush1.bf16.msra.mxu0 %v3268_v50  ;;  %v3329_v50 = vld [vmem:[#allocation13 + $0x78] sm:$0xff]  }
 0x8e1   : > { %2179 = vmatprep.subr.bf16.mxu0 %v3276_v57 }
 0x8e4   : > { %2180 = vmatpush1.bf16.msra.mxu0 %v3274_v59  ;;  %v1950_v59 = vld [vmem:[%s4384_s23] sm:$0xf] }
 0x8e5   : > { %2181 = vmatprep.subr.bf16.mxu0 %v3282_v61 }
 0x8e8   : > { %2182 = vmatpush1.bf16.msra.mxu0 %v3280_v63 }
 0x8e9   : > { %2183 = vmatprep.subr.bf16.mxu0 %v3288_v1 }
 0x8ec   : > { %2184 = vmatpush1.bf16.msra.mxu0 %v3286_v3 }
 0x8ed   : > { %2185 = vmatprep.subr.bf16.mxu0 %v3294_v5 }
 0x8f0   : > { %2186 = vmatpush1.bf16.msra.mxu0 %v3292_v8 }
 0x8f1   : > { %2187 = vmatprep.subr.bf16.mxu0 %v3300_v10 }
 0x8f4   : > { %2188 = vmatpush1.bf16.msra.mxu0 %v3298_v13 }
 0x8f5   : > { %2937 = vmatprep.subr.bf16.mxu0 %v3302_v15 }
 0x9aa   : > { %v1884_v35 = vpop.f32.mrb[28].mxu0 }
 0x9ab   : > { %v4259_v36 = vadd.f32 %v3373_v52, %v1884_v35  ;;  %v3093_v37 = vpop.f32.mrb[29].mxu0  ;;  %v3313_v35 = vld [vmem:[#allocation13 + $0x58] sm:$0xff]  }
 0x9ac   : > { %v1887_v38 = vpop.f32.mrb[30].mxu0  ;;  %v3314_v52 = vld [vmem:[#allocation13 + $0xd8] sm:$0xff]  }
 0x9ad   : > { %1892 = vadd.xlane.f32.xlu0 %v4259_v36  ;;  %v3094_v39 = vpop.f32.mrb[31].mxu0  ;;  %v3315_v37 = vld [vmem:[#allocation13 + $0x18] sm:$0xff]  }
 0x9ae   : > { %v3316_v38 = vld [vmem:[#allocation13 + $0x98] sm:$0xff]   ;;  %v3317_v39 = vld [vmem:[#allocation13 + $0x60] sm:$0xff]  }
 0xa3a   : > { %v1893_v51 = vpop.xlane.xlu0 %1892 }
 0xa3b   : > { %v1894_v53 = vmul.f32 0.0078125, %v1893_v51  ;;  %v3330_v51 = vld [vmem:[#allocation13 + $0xf8] sm:$0xff]  }
 0xa3d   : > { %v1895_v54 = vsub.f32 %v4259_v36, %v1894_v53  ;;  %v3331_v53 = vld [vmem:[#allocation13 + $0x38] sm:$0xff]  }
 0xa3f   : > { %v1896_v55 = vmul.f32 %v1895_v54, %v1895_v54 }
 0xa41   : > { %1897 = vadd.xlane.f32.xlu1 %v1896_v55  ;;  %v1952_v55 = vlaneseq }
 0xa43   : > { %v1953_v56 = vshrl.u32 %v1952_v55, 7 }
 0xa45   : > { %v1954_v57 = vsub.s32 0, %v1953_v56  ;;  %v1962_v58 = vsub.s32 2, %v1953_v56  ;;  %v1958_v60 = vsub.s32 1, %v1953_v56  ;;  %v1966_v61 = vsub.s32 3, %v1953_v56 }
 0xa47   : > { %v1955_v62 = vrot.slane %v1950_v59, %v1954_v57  ;;  %v1963_v63 = vrot.slane %v1950_v59, %v1962_v58  ;;  %v1959_v0 = vrot.slane %v1950_v59, %v1958_v60  ;;  %v1967_v1 = vrot.slane %v1950_v59, %v1966_v61 }
 0xace   : > { %v1898_v16 = vpop.xlane.xlu1 %1897 }
 0xacf   : > { %v1899_v17 = vmul.f32 0.0078125, %v1898_v16 }
 0xad1   : > { %v1900_v18 = vadd.f32 1e-05, %v1899_v17 }
 0xad3   : > { %3371 = vrsqrt.f32 %v1900_v18 }
 0xadd   : > { %v3372_v19 = vpop.eup %3371 }
 0xade   : > { %v1902_v21 = vmul.f32 %v3372_v19, %v1895_v54  ;;  %v3332_v54 = vld [vmem:[#allocation13 + $0xb8] sm:$0xff]  }
 0xae0   : > { %v1909_v22 = vmul.f32 %v2793_v20, %v1902_v21 }
 0xae2   : > { %v1916_v6 = vadd.f32 %v2794_v12, %v1909_v22 }
 0xae4   : > { %v1917_v25 = vpack.c.bf16 %v1916_v6, %v1916_v6 }
 0xae6   : > { %2165 = vmatmul.mubr.bf16.vlgmr.msra.gmra.mrb[44].mxu1 %v1917_v25  ;;  %2206 = vmatmul.mubr.bf16.vlgmr.msra.gmra.mrb[32].mxu0 %v1917_v25 }
 0xae7   : > { %2916 = vmatpush3.bf16.msra.mxu1 %v3303_v23  ;;  %2938 = vmatpush3.bf16.msra.mxu0 %v3304_v24  ;;  %v2827_v24 = vld [vmem:[%s4385_s4] ss:$0 sm:$0xff] }
 0xae8   : > { %2917 = vmatprep.subr.bf16.mxu1 %v3305_v26  ;;  %2939 = vmatprep.subr.bf16.mxu0 %v3306_v27 }
 0xaeb   : > { %2918 = vmatpush3.bf16.msra.mxu1 %v3307_v28  ;;  %2940 = vmatpush3.bf16.msra.mxu0 %v3308_v29 }
 0xaec   : > { %2919 = vmatprep.subr.bf16.mxu1 %v3309_v30  ;;  %2941 = vmatprep.subr.bf16.mxu0 %v3310_v31 }
 0xaef   : > { %2920 = vmatpush3.bf16.msra.mxu1 %v3311_v33  ;;  %2942 = vmatpush3.bf16.msra.mxu0 %v3312_v34 }
 0xaf0   : > { %2921 = vmatprep.subr.bf16.mxu1 %v3313_v35  ;;  %2943 = vmatprep.subr.bf16.mxu0 %v3314_v52 }
 0xaf3   : > { %2922 = vmatpush3.bf16.msra.mxu1 %v3315_v37  ;;  %2944 = vmatpush3.bf16.msra.mxu0 %v3316_v38 }
 0xaf4   : > { %2923 = vmatprep.subr.bf16.mxu1 %v3317_v39  ;;  %2945 = vmatprep.subr.bf16.mxu0 %v3318_v40 }
 0xaf7   : > { %2924 = vmatpush3.bf16.msra.mxu1 %v3319_v41  ;;  %2946 = vmatpush3.bf16.msra.mxu0 %v3320_v42 }
 0xaf8   : > { %2925 = vmatprep.subr.bf16.mxu1 %v3321_v43  ;;  %2947 = vmatprep.subr.bf16.mxu0 %v3322_v44 }
 0xafb   : > { %2926 = vmatpush3.bf16.msra.mxu1 %v3323_v45  ;;  %2948 = vmatpush3.bf16.msra.mxu0 %v3324_v46 }
 0xafc   : > { %2927 = vmatprep.subr.bf16.mxu1 %v3325_v32  ;;  %2949 = vmatprep.subr.bf16.mxu0 %v3326_v47 }
 0xaff   : > { %2928 = vmatpush3.bf16.msra.mxu1 %v3327_v48  ;;  %2950 = vmatpush3.bf16.msra.mxu0 %v3328_v49 }
 0xb00   : > { %2929 = vmatprep.subr.bf16.mxu1 %v3329_v50  ;;  %2951 = vmatprep.subr.bf16.mxu0 %v3330_v51 }
 0xb03   : > { %2930 = vmatpush3.bf16.msra.mxu1 %v3331_v53  ;;  %2952 = vmatpush3.bf16.msra.mxu0 %v3332_v54 }
 0xbb9   : > { %v2166_v2 = vpop.f32.mrb[44].mxu1  ;;  %v2207_v3 = vpop.f32.mrb[32].mxu0 }
 0xbba   : > { %v2167_v4 = vadd.f32 %v2166_v2, %v1955_v62  ;;  %v2208_v5 = vadd.f32 %v2207_v3, %v1963_v63  ;;  %v2168_v7 = vpop.f32.mrb[45].mxu1  ;;  %v2209_v8 = vpop.f32.mrb[33].mxu0 }
 0xbbb   : > { %v2169_v9 = vadd.f32 %v2168_v7, %v1959_v0  ;;  %v2210_v10 = vadd.f32 %v2209_v8, %v1967_v1  ;;  %v2170_v11 = vpop.f32.mrb[46].mxu1  ;;  %v2211_v13 = vpop.f32.mrb[34].mxu0 }
 0xbbc   : > { %v2214_v14 = vmax.f32 %v2167_v4, 0.0  ;;  %v2216_v15 = vmax.f32 %v2208_v5, 0.0  ;;  %v2171_v16 = vpop.f32.mrb[47].mxu1  ;;  %v2212_v17 = vpop.f32.mrb[35].mxu0 }
 0xbbd   : > { %v2215_v18 = vmax.f32 %v2169_v9, 0.0  ;;  %v2217_v19 = vmax.f32 %v2210_v10, 0.0 }
 0xbbe   : > { %v2218_v12 = vpack.c.bf16 %v2214_v14, %v2214_v14  ;;  %v2220_v22 = vpack.c.bf16 %v2216_v15, %v2216_v15 }
 0xbbf   : > { %v2219_v20 = vpack.c.bf16 %v2215_v18, %v2215_v18  ;;  %v2221_v21 = vpack.c.bf16 %v2217_v19, %v2217_v19 }
 0xbc1   : > { %2517 = vmatprep.mubr.bf16.mxu1 %v2219_v20  ;;  %2557 = vmatprep.mubr.bf16.mxu0 %v2221_v21 }
 0xbc2   : > { %2518 = vmatmul.mubr.bf16.vlgmr.msra.gmra.mrb[48].mxu1 %v2218_v12  ;;  %2558 = vmatmul.mubr.bf16.vlgmr.msra.gmra.mrb[36].mxu0 %v2220_v22 }
 0xc95   : > { %v2931_v6 = vpop.f32.mrb[48].mxu1  ;;  %v2953_v23 = vpop.f32.mrb[36].mxu0 }
 0xc96   : > { %v2932_v25 = vpop.f32.mrb[49].mxu1  ;;  %v2954_v26 = vpop.f32.mrb[37].mxu0 }
 0xc97   : > { %v2933_v27 = vadd.f32 %v2932_v25, %v2931_v6  ;;  %v2955_v28 = vadd.f32 %v2954_v26, %v2953_v23  ;;  %v2934_v29 = vpop.f32.mrb[50].mxu1  ;;  %v2956_v30 = vpop.f32.mrb[38].mxu0 }
 0xc98   : > { %v2935_v31 = vpop.f32.mrb[51].mxu1  ;;  %v2957_v33 = vpop.f32.mrb[39].mxu0 }
 0xc99   : > { %v2520_v34 = vadd.f32 %v2933_v27, %v2827_v24 }
 0xc9b   : > { %v2560_v35 = vadd.f32 %v2955_v28, %v2520_v34 }
 0xc9d   : > { %v2565_v52 = vadd.f32 %v2560_v35, %v4259_v36 }
 0xc9f   : > { %2566 = vst [vmem:[%s567_s30] sm:$0xff] %v2565_v52 }
 0xca0   : > { %3587 = shalt.err (!%p3584_p8)
}
 0xca1   : > { %s3588_s13 = scalar_lea.hbm %s4282_s22, 128  ;;  %s3592_s2 = scalar_lea.hbm %s4386_s12, 256 }
 0xca2   : > { %p3589_p4 = scmp.ne.s32.totalorder %s4282_s22, %s3588_s13  ;;  %p3593_p1 = scmp.lt.u32.totalorder %s4282_s22, %s4386_s12 }
 0xca3   : > { %p3594_p11 = scmp.lt.u32.totalorder %s3592_s2, %s3588_s13  ;;  %p3596_p2 = scmp.lt.u32.totalorder %s3588_s13, %s4282_s22 }
 0xca4   : > { %p3590_p3 = pnand %p3589_p4, %p4387_p13 }
 0xca5   : > { %p3595_p12 = por %p3594_p11, %p3593_p1 }
 0xca6   : > { %p3591_p10 = pneg %p3590_p3 }
 0xca7   : > { %p3597_p6 = por %p3596_p2, %p3595_p12 }
 0xca9   : > { %p3598_p9 = pnand %p3597_p6, %p3591_p10 }
 0xcab   : > { %3601 = shalt.err (!%p3598_p9)
}
 0xcac   : > { %3119 = dma.vmem_to_hbm [thread:$0]  (%p4387_p13), %s4284_s0, 128, %s4282_s22, %s2568_s7  }
 0xcad PF: > { %s2593_s17 = sand.u32 1, %s3644_s25   ;;  %p4388_p0 = scmp.ne.s32.totalorder %s4370_s10, 0 }
 0xcae   : > { %p4389_p5 = scmp.ge.s32.totalorder %s3656_s28, 2  ;;  %s2594_s30 = scalar_lea.sflag [#allocation4], %s2593_s17 }
 0xcb0   : > { %p3145_p7 = pnand %p4389_p5, %p4388_p0 }
 0xcb2   : > { %3639 = dma.done.wait (!%p3145_p7), %s2594_s30, 128  }
 0xcb3   : > { %3641 = vsyncadd (!%p3145_p7), %s2594_s30, 4294967168  ;;  %p31_p8 = scmp.ge.s32.totalorder %s3918_s16, 4   ;;  %s4390_s25 = smov %s3648_s26 }
 0xcb4   : > { %s4391_s26 = smov %s3652_s27  ;;  %s4392_s27 = smov %s3930_s3 }
 0xcb5   : > { %s4393_s28 = smov %s3918_s16  ;;  %33 = sbr.rel (!%p31_p8) target bundleno = 19 (0x13), region = 150 }
 0xcbc   :  { %2599 = vsyncpa [#allocation3], 1 }
 0xcbd   :  { %2601 = vsyncpa [#allocation3 + $0x1], 1 }
 0xcbe   :  { %2602 = vsyncpa [#allocation6], 1 }
 0xcbf   :  { %2604 = vsyncpa [#allocation6 + $0x1], 1 }
 0xcc0   :  { %2605 = vsyncpa [#allocation9], 1 }
 0xcc1   :  { %2606 = vsyncpa [#allocation12], 1 }
 0xcc2   :  { %2607 = vsyncpa [#allocation4], 1 }
 0xcc3   :  { %2609 = vsyncpa [#allocation4 + $0x1], 1 }

</bundles_post_ra>
